<compile_context>
chip_gen: v7x
topology: tpu7x:2x2x1
jax: 0.10.0
libtpu: 0.0.40
codegen_flags: <defaults>
</compile_context>

<pallas_src>
import functools

import jax
import jax.numpy as jnp
from jax.experimental import pallas as pl
from jax.experimental.pallas import tpu as pltpu


def _largest_divisor_leq(n: int, target: int) -> int:
    """Largest divisor of n that is <= target (>= 1)."""
    t = max(1, min(n, target))
    while n % t:
        t -= 1
    return t


def _orpo_fwd_kernel(x_ref, w_ref, b_ref, t_ref, stats_ref,
                     m_run, l_run, tgt_run, lsum_run,
                     *, ignore_index: int, tile_v: int):
    """Fused linear + online log-softmax + target gather over one vocab tile.

    x_ref:     (1, TILE_T, H)   VMEM (resident across the vocab sweep)
    w_ref:     (TILE_V, H)      VMEM (streamed per vocab tile)
    b_ref:     (1, TILE_V)      VMEM f32
    t_ref:     (1, TILE_T, 1)   VMEM int32
    stats_ref: (1, 1, 128)      VMEM f32 output (lanes 0..2 = sum_logp, valid_count, logits_sum)
    scratch:   m_run/l_run/tgt_run (TILE_T, 1) f32, lsum_run (1, 1) f32
    """
    kv = pl.program_id(2)

    @pl.when(kv == 0)
    def _():
        m_run[...] = jnp.full_like(m_run, -jnp.inf)
        l_run[...] = jnp.zeros_like(l_run)
        tgt_run[...] = jnp.zeros_like(tgt_run)
        lsum_run[...] = jnp.zeros_like(lsum_run)

    x = x_ref[0]                  # (TILE_T, H)
    w = w_ref[...]                # (TILE_V, H)

    # logits tile = x @ W_tile^T + bias_tile, accumulated in f32 on the MXU
    logits = jax.lax.dot_general(
        x, w, (((1,), (1,)), ((), ())),
        preferred_element_type=jnp.float32,
    ) + b_ref[...]                # (TILE_T, TILE_V) f32

    tgt = t_ref[0]                # (TILE_T, 1) int32

    # Fused target gather (one-hot via iota compare; ignore_index never matches a column).
    col = jax.lax.broadcasted_iota(jnp.int32, logits.shape, 1) + kv * tile_v
    tgt_run[...] += jnp.sum(jnp.where(col == tgt, logits, 0.0),
                            axis=-1, keepdims=True)

    # Online softmax update (running max / running sum-exp).
    m_prev = m_run[...]
    m_new = jnp.maximum(m_prev, jnp.max(logits, axis=-1, keepdims=True))
    l_run[...] = (l_run[...] * jnp.exp(m_prev - m_new)
                  + jnp.sum(jnp.exp(logits - m_new), axis=-1, keepdims=True))
    m_run[...] = m_new

    # Running sum of all logits (for the chosen/rejected logits-mean aux outputs).
    lsum_run[...] += jnp.reshape(jnp.sum(logits), (1, 1))

    @pl.when(kv == pl.num_programs(2) - 1)
    def _():
        per_tok = tgt_run[...] - m_run[...] - jnp.log(l_run[...])   # (TILE_T, 1) target logp
        maskf = (tgt != ignore_index).astype(jnp.float32)
        sum_lp = jnp.sum(per_tok * maskf)
        cnt = jnp.sum(maskf)
        lsum = lsum_run[0, 0]
        lane = jax.lax.broadcasted_iota(jnp.int32, (1, 1, 128), 2)
        stats_ref[...] = jnp.where(
            lane == 0, sum_lp,
            jnp.where(lane == 1, cnt,
                      jnp.where(lane == 2, lsum, 0.0)))


def _fused_linear_orpo_stats(_input, lin_weight, bias, target, ignore_index,
                             tile_t_target: int = 256, tile_v_target: int = 1024,
                             compute_dtype=None):
    """Run the V-tiled Pallas kernel over (B, T_tiles, V_tiles); returns per-sequence
    (sum of target log-probs, valid-token count, sum of logits)."""
    B, T, H = _input.shape
    V = lin_weight.shape[0]

    if compute_dtype is not None:           # optional bf16 MXU feed (keeps f32 accumulation)
        _input = _input.astype(compute_dtype)
        lin_weight = lin_weight.astype(compute_dtype)

    tile_t = _largest_divisor_leq(T, tile_t_target)
    tile_v = _largest_divisor_leq(V, tile_v_target)
    n_t = T // tile_t
    n_v = V // tile_v

    tgt3 = target.astype(jnp.int32).reshape(B, T, 1)
    if bias is None:
        bias2 = jnp.zeros((1, V), jnp.float32)
    else:
        bias2 = bias.reshape(1, V).astype(jnp.float32)   # bias stays f32 (added post-MXU)

    kernel = functools.partial(_orpo_fwd_kernel,
                               ignore_index=ignore_index, tile_v=tile_v)

    itemsize = jnp.dtype(_input.dtype).itemsize
    vmem_needed = (2 * tile_v * H * itemsize      # weight tile, double-buffered
                   + 2 * tile_t * H * itemsize    # activation tile
                   + 2 * tile_v * 4               # bias tile (f32)
                   + 2 * tile_t * 4               # target tile
                   + 2 * 128 * 4                  # packed stats output
                   + 4 * tile_t * tile_v * 4      # logits / exp temporaries headroom
                   + 8 * tile_t * 4)              # scratch accumulators
    vmem_limit = int(min(max(vmem_needed + (4 << 20), 16 << 20), 64 << 20))

    stats = pl.pallas_call(
        kernel,
        out_shape=jax.ShapeDtypeStruct((B, n_t, 128), jnp.float32),
        grid=(B, n_t, n_v),
        in_specs=[
            # activation tile: index_map independent of kv -> resident across the vocab sweep
            pl.BlockSpec((1, tile_t, H), lambda b, t, kv: (b, t, 0)),
            # weight / bias tiles streamed along the vocab axis
            pl.BlockSpec((tile_v, H), lambda b, t, kv: (kv, 0)),
            pl.BlockSpec((1, tile_v), lambda b, t, kv: (0, kv)),
            pl.BlockSpec((1, tile_t, 1), lambda b, t, kv: (b, t, 0)),
        ],
        out_specs=pl.BlockSpec((1, 1, 128), lambda b, t, kv: (b, t, 0)),
        scratch_shapes=[
            pltpu.VMEM((tile_t, 1), jnp.float32),   # running max
            pltpu.VMEM((tile_t, 1), jnp.float32),   # running sum-exp
            pltpu.VMEM((tile_t, 1), jnp.float32),   # running target logit
            pltpu.VMEM((1, 1), jnp.float32),        # running logits sum
        ],
        compiler_params=pltpu.CompilerParams(
            dimension_semantics=("parallel", "parallel", "arbitrary"),
            vmem_limit_bytes=vmem_limit),
    )(_input, lin_weight, bias2, tgt3)

    sum_lp = jnp.sum(stats[..., 0], axis=1)   # (B,)
    cnt = jnp.sum(stats[..., 1], axis=1)      # (B,)
    lsum = jnp.sum(stats[..., 2], axis=1)     # (B,)
    return sum_lp, cnt, lsum


class LigerFusedLinearORPOLoss:
    """JAX/Pallas re-implementation of the torch module's forward pass."""

    def __init__(self, ignore_index: int = -100, beta: float = 0.1,
                 compute_nll_loss: bool = True, compiled: bool = True):
        self.ignore_index = ignore_index
        self.beta = beta
        self.compute_nll_loss = compute_nll_loss
        self.compiled = compiled  # no-op here; kernel is always compiled

    def __call__(self, lin_weight, _input, target, bias=None, nll_target=None):
        B, T, H = _input.shape
        V = lin_weight.shape[0]
        half = B // 2

        # --- Pallas hot path: V-tiled fused linear + online log-softmax + reductions ---
        sum_lp, cnt, lsum = _fused_linear_orpo_stats(
            _input, lin_weight, bias, target, self.ignore_index)

        # --- tiny per-batch scalar combine (plain JAX glue) ---
        avg_logps = sum_lp / cnt
        chosen_logps = avg_logps[:half]
        rejected_logps = avg_logps[half:]

        if self.compute_nll_loss:
            chosen_tok_count = jnp.sum(cnt[:half])
            if nll_target is not None:
                nll_tgt = nll_target[:half] if nll_target.shape[0] == B else nll_target
                nll_sum_lp, _, _ = _fused_linear_orpo_stats(
                    _input[:half], lin_weight, bias, nll_tgt, self.ignore_index)
                # TODO(synk): Liger normalizes the NLL term by the non-ignored count of the
                # *target* chosen half; confirm whether the nll_target count is intended instead.
                chosen_nll_loss = -jnp.sum(nll_sum_lp) / chosen_tok_count
            else:
                chosen_nll_loss = -jnp.sum(sum_lp[:half]) / chosen_tok_count
        else:
            chosen_nll_loss = jnp.float32(0.0)

        # ORPO odds-ratio preference loss
        log_odds = (chosen_logps - rejected_logps) - (
            jnp.log1p(-jnp.exp(chosen_logps)) - jnp.log1p(-jnp.exp(rejected_logps)))
        ratio = jax.nn.log_sigmoid(log_odds)
        or_loss = -self.beta * jnp.sum(ratio) / half

        loss = chosen_nll_loss + or_loss

        chosen_rewards = self.beta * chosen_logps
        rejected_rewards = self.beta * rejected_logps
        log_odds_ratio = jnp.sum(ratio) / half
        log_odds_chosen = jnp.sum(log_odds) / half
        chosen_logits_mean = jnp.sum(lsum[:half]) / (half * T * V)
        rejected_logits_mean = jnp.sum(lsum[half:]) / (half * T * V)

        aux = (chosen_logps, rejected_logps, chosen_logits_mean,
               rejected_logits_mean, chosen_nll_loss,
               chosen_rewards, rejected_rewards, log_odds_ratio, log_odds_chosen)
        return loss, aux


def _reference_loss(lin_weight, _input, target, bias, ignore_index=-100, beta=0.1,
                    compute_nll_loss=True):
    """Pure-JAX reference mirroring the PyTorch semantics (sanity check)."""
    B, T, H = _input.shape
    half = B // 2
    logits = jnp.einsum("bth,vh->btv", _input, lin_weight) + bias
    logp = jax.nn.log_softmax(logits.astype(jnp.float32), axis=-1)
    mask = target != ignore_index
    safe = jnp.where(mask, target, 0)
    per_tok = jnp.take_along_axis(logp, safe[..., None], axis=-1)[..., 0]
    avg = jnp.sum(per_tok * mask, axis=-1) / jnp.sum(mask, axis=-1)
    chosen, rejected = avg[:half], avg[half:]
    nll = (-jnp.sum(jnp.where(mask[:half], per_tok[:half], 0.0))
           / jnp.sum(mask[:half])) if compute_nll_loss else 0.0
    log_odds = (chosen - rejected) - (jnp.log1p(-jnp.exp(chosen)) - jnp.log1p(-jnp.exp(rejected)))
    ratio = jax.nn.log_sigmoid(log_odds)
    return nll + (-beta * jnp.sum(ratio) / half)


if __name__ == "__main__":
    key = jax.random.PRNGKey(0)
    k1, k2, k3, k4 = jax.random.split(key, 4)

    # B = 2 * batch (2 chosen + 2 rejected), seq T, hidden H, vocab V.
    # V = 2048 spans two 1024-wide vocab tiles -> exercises the online-softmax accumulation.
    B, T, H, V = 4, 16, 64, 2048

    _input = 0.5 * jax.random.normal(k1, (B, T, H), dtype=jnp.float32)
    lin_weight = 0.05 * jax.random.normal(k2, (V, H), dtype=jnp.float32)
    bias = 0.05 * jax.random.normal(k3, (V,), dtype=jnp.float32)
    target = jax.random.randint(k4, (B, T), 0, V, dtype=jnp.int32)
    target = target.at[:, 0].set(-100)  # exercise ignore_index on a few tokens

    loss_mod = LigerFusedLinearORPOLoss(ignore_index=-100, beta=0.1, compute_nll_loss=True)
    loss, aux = loss_mod(lin_weight, _input, target, bias)
    loss = jax.block_until_ready(loss)
    jax.block_until_ready(aux)

    ref = jax.block_until_ready(_reference_loss(lin_weight, _input, target, bias))
    assert jnp.allclose(loss, ref, rtol=2e-3, atol=2e-3), (loss, ref)

    print("KERNEL_OK")
</pallas_src>

<mosaic_0001>
module attributes {stable_mosaic.version = 11 : i64} {
  func.func @_orpo_fwd_kernel(%arg0: i32, %arg1: i32, %arg2: i32, %arg3: memref<1x16x64xf32, #tpu.memory_space<vmem>>, %arg4: memref<1024x64xf32, #tpu.memory_space<vmem>>, %arg5: memref<1x1024xf32, #tpu.memory_space<vmem>>, %arg6: memref<1x16x1xi32, #tpu.memory_space<vmem>>, %arg7: memref<1x1x128xf32, #tpu.memory_space<vmem>>, %arg8: memref<16x1xf32, #tpu.memory_space<vmem>>, %arg9: memref<16x1xf32, #tpu.memory_space<vmem>>, %arg10: memref<16x1xf32, #tpu.memory_space<vmem>>, %arg11: memref<1x1xf32, #tpu.memory_space<vmem>>) attributes {dimension_semantics = [#tpu.dimension_semantics<parallel>, #tpu.dimension_semantics<parallel>, #tpu.dimension_semantics<arbitrary>], iteration_bounds = array<i64: 4, 1, 2>, scalar_prefetch = 0 : i64, scratch_operands = 4 : i64, tpu.core_type = #tpu.core_type<tc>, window_params = [{transform_indices = @transform_0, window_bounds = array<i64: 1, 16, 64>}, {transform_indices = @transform_1, window_bounds = array<i64: 1024, 64>}, {transform_indices = @transform_2, window_bounds = array<i64: 1, 1024>}, {transform_indices = @transform_3, window_bounds = array<i64: 1, 16, 1>}, {transform_indices = @transform_4, window_bounds = array<i64: 1, 1, 128>}]} {
    %c0_i32 = arith.constant 0 : i32
    %0 = arith.cmpi eq, %arg2, %c0_i32 : i32
    %1 = arith.extui %0 : i1 to i32
    %c0_i32_0 = arith.constant 0 : i32
    %2 = arith.cmpi ne, %1, %c0_i32_0 : i32
    scf.if %2 {
      %cst_32 = arith.constant 0xFF800000 : f32
      %52 = vector.broadcast %cst_32 : f32 to vector<16x1xf32>
      %c0_33 = arith.constant 0 : index
      %c0_34 = arith.constant 0 : index
      %53 = vector.load %arg8[%c0_33, %c0_34] : memref<16x1xf32, #tpu.memory_space<vmem>>, vector<16x1xf32>
      tpu.vector_store %arg8[%c0_33, %c0_34], %52 {strides = array<i32>} : memref<16x1xf32, #tpu.memory_space<vmem>>, vector<16x1xf32>,
      %cst_35 = arith.constant 0.000000e+00 : f32
      %54 = vector.broadcast %cst_35 : f32 to vector<16x1xf32>
      %c0_36 = arith.constant 0 : index
      %c0_37 = arith.constant 0 : index
      %55 = vector.load %arg9[%c0_36, %c0_37] : memref<16x1xf32, #tpu.memory_space<vmem>>, vector<16x1xf32>
      tpu.vector_store %arg9[%c0_36, %c0_37], %54 {strides = array<i32>} : memref<16x1xf32, #tpu.memory_space<vmem>>, vector<16x1xf32>,
      %cst_38 = arith.constant 0.000000e+00 : f32
      %56 = vector.broadcast %cst_38 : f32 to vector<16x1xf32>
      %c0_39 = arith.constant 0 : index
      %c0_40 = arith.constant 0 : index
      %57 = vector.load %arg10[%c0_39, %c0_40] : memref<16x1xf32, #tpu.memory_space<vmem>>, vector<16x1xf32>
      tpu.vector_store %arg10[%c0_39, %c0_40], %56 {strides = array<i32>} : memref<16x1xf32, #tpu.memory_space<vmem>>, vector<16x1xf32>,
      %cst_41 = arith.constant 0.000000e+00 : f32
      %58 = vector.broadcast %cst_41 : f32 to vector<1x1xf32>
      %c0_42 = arith.constant 0 : index
      %c0_43 = arith.constant 0 : index
      %59 = vector.load %arg11[%c0_42, %c0_43] : memref<1x1xf32, #tpu.memory_space<vmem>>, vector<1x1xf32>
      tpu.vector_store %arg11[%c0_42, %c0_43], %58 {strides = array<i32>} : memref<1x1xf32, #tpu.memory_space<vmem>>, vector<1x1xf32>,
    } else {
    }
    %c0 = arith.constant 0 : index
    %c0_1 = arith.constant 0 : index
    %c0_2 = arith.constant 0 : index
    %3 = vector.load %arg3[%c0, %c0_1, %c0_2] : memref<1x16x64xf32, #tpu.memory_space<vmem>>, vector<1x16x64xf32>
    %4 = vector.shape_cast %3 : vector<1x16x64xf32> to vector<16x64xf32>
    %c0_3 = arith.constant 0 : index
    %c0_4 = arith.constant 0 : index
    %5 = vector.load %arg4[%c0_3, %c0_4] : memref<1024x64xf32, #tpu.memory_space<vmem>>, vector<1024x64xf32>
    %cst = arith.constant dense<0.000000e+00> : vector<16x1024xf32>
    %6 = tpu.matmul %4, %5, %cst {dimension_numbers = #tpu.dot_dimension_numbers<[1], [1], [0], [0], [0, 0, 1, 0], [], []>} : vector<16x64xf32>, vector<1024x64xf32>, vector<16x1024xf32> -> vector<16x1024xf32>
    %c0_5 = arith.constant 0 : index
    %c0_6 = arith.constant 0 : index
    %7 = vector.load %arg5[%c0_5, %c0_6] : memref<1x1024xf32, #tpu.memory_space<vmem>>, vector<1x1024xf32>
    %8 = vector.broadcast %7 : vector<1x1024xf32> to vector<16x1024xf32>
    %9 = arith.addf %6, %8 : vector<16x1024xf32>
    %c0_7 = arith.constant 0 : index
    %c0_8 = arith.constant 0 : index
    %c0_9 = arith.constant 0 : index
    %10 = vector.load %arg6[%c0_7, %c0_8, %c0_9] : memref<1x16x1xi32, #tpu.memory_space<vmem>>, vector<1x16x1xi32>
    %11 = vector.shape_cast %10 : vector<1x16x1xi32> to vector<16x1xi32>
    %12 = tpu.iota {dimensions = array<i32: 1>} : vector<16x1024xi32>
    %c1024_i32 = arith.constant 1024 : i32
    %13 = arith.muli %arg2, %c1024_i32 : i32
    %14 = vector.broadcast %13 : i32 to vector<16x1024xi32>
    %15 = arith.addi %12, %14 : vector<16x1024xi32>
    %c0_10 = arith.constant 0 : index
    %c0_11 = arith.constant 0 : index
    %16 = vector.load %arg10[%c0_10, %c0_11] : memref<16x1xf32, #tpu.memory_space<vmem>>, vector<16x1xf32>
    %17 = vector.broadcast %11 : vector<16x1xi32> to vector<16x1024xi32>
    %18 = arith.cmpi eq, %15, %17 : vector<16x1024xi32>
    %cst_12 = arith.constant 0.000000e+00 : f32
    %19 = vector.broadcast %cst_12 : f32 to vector<16x1024xf32>
    %20 = arith.select %18, %9, %19 : vector<16x1024xi1>, vector<16x1024xf32>
    %cst_13 = arith.constant dense<0.000000e+00> : vector<16xf32>
    %21 = vector.multi_reduction <add>, %20, %cst_13 [1] : vector<16x1024xf32> to vector<16xf32>
    %22 = vector.shape_cast %21 : vector<16xf32> to vector<16x1xf32>
    %23 = arith.addf %16, %22 : vector<16x1xf32>
    %c0_14 = arith.constant 0 : index
    %c0_15 = arith.constant 0 : index
    %24 = vector.load %arg10[%c0_14, %c0_15] : memref<16x1xf32, #tpu.memory_space<vmem>>, vector<16x1xf32>
    tpu.vector_store %arg10[%c0_14, %c0_15], %23 {strides = array<i32>} : memref<16x1xf32, #tpu.memory_space<vmem>>, vector<16x1xf32>,
    %c0_16 = arith.constant 0 : index
    %c0_17 = arith.constant 0 : index
    %25 = vector.load %arg8[%c0_16, %c0_17] : memref<16x1xf32, #tpu.memory_space<vmem>>, vector<16x1xf32>
    %cst_18 = arith.constant dense<0xFF800000> : vector<16xf32>
    %26 = vector.multi_reduction <maximumf>, %9, %cst_18 [1] : vector<16x1024xf32> to vector<16xf32>
    %27 = vector.shape_cast %26 : vector<16xf32> to vector<16x1xf32>
    %28 = arith.maximumf %25, %27 : vector<16x1xf32>
    %c0_19 = arith.constant 0 : index
    %c0_20 = arith.constant 0 : index
    %29 = vector.load %arg9[%c0_19, %c0_20] : memref<16x1xf32, #tpu.memory_space<vmem>>, vector<16x1xf32>
    %30 = arith.subf %25, %28 : vector<16x1xf32>
    %31 = math.exp %30 : vector<16x1xf32>
    %32 = arith.mulf %29, %31 : vector<16x1xf32>
    %33 = vector.broadcast %28 : vector<16x1xf32> to vector<16x1024xf32>
    %34 = arith.subf %9, %33 : vector<16x1024xf32>
    %35 = math.exp %34 : vector<16x1024xf32>
    %cst_21 = arith.constant dense<0.000000e+00> : vector<16xf32>
    %36 = vector.multi_reduction <add>, %35, %cst_21 [1] : vector<16x1024xf32> to vector<16xf32>
    %37 = vector.shape_cast %36 : vector<16xf32> to vector<16x1xf32>
    %38 = arith.addf %32, %37 : vector<16x1xf32>
    %c0_22 = arith.constant 0 : index
    %c0_23 = arith.constant 0 : index
    %39 = vector.load %arg9[%c0_22, %c0_23] : memref<16x1xf32, #tpu.memory_space<vmem>>, vector<16x1xf32>
    tpu.vector_store %arg9[%c0_22, %c0_23], %38 {strides = array<i32>} : memref<16x1xf32, #tpu.memory_space<vmem>>, vector<16x1xf32>,
    %c0_24 = arith.constant 0 : index
    %c0_25 = arith.constant 0 : index
    %40 = vector.load %arg8[%c0_24, %c0_25] : memref<16x1xf32, #tpu.memory_space<vmem>>, vector<16x1xf32>
    tpu.vector_store %arg8[%c0_24, %c0_25], %28 {strides = array<i32>} : memref<16x1xf32, #tpu.memory_space<vmem>>, vector<16x1xf32>,
    %c0_26 = arith.constant 0 : index
    %c0_27 = arith.constant 0 : index
    %41 = vector.load %arg11[%c0_26, %c0_27] : memref<1x1xf32, #tpu.memory_space<vmem>>, vector<1x1xf32>
    %42 = vector.shape_cast %9 : vector<16x1024xf32> to vector<1x16x1024xf32>
    %cst_28 = arith.constant dense<0.000000e+00> : vector<1xf32>
    %43 = vector.multi_reduction <add>, %42, %cst_28 [1, 2] : vector<1x16x1024xf32> to vector<1xf32>
    %44 = vector.shape_cast %43 : vector<1xf32> to vector<1x1x1xf32>
    %45 = vector.extract %44[0, 0, 0] : f32 from vector<1x1x1xf32>
    %46 = vector.broadcast %45 : f32 to vector<1x1xf32>
    %47 = arith.addf %41, %46 : vector<1x1xf32>
    %c0_29 = arith.constant 0 : index
    %c0_30 = arith.constant 0 : index
    %48 = vector.load %arg11[%c0_29, %c0_30] : memref<1x1xf32, #tpu.memory_space<vmem>>, vector<1x1xf32>
    tpu.vector_store %arg11[%c0_29, %c0_30], %47 {strides = array<i32>} : memref<1x1xf32, #tpu.memory_space<vmem>>, vector<1x1xf32>,
    %c1_i32 = arith.constant 1 : i32
    %49 = arith.cmpi eq, %arg2, %c1_i32 : i32
    %50 = arith.extui %49 : i1 to i32
    %c0_i32_31 = arith.constant 0 : i32
    %51 = arith.cmpi ne, %50, %c0_i32_31 : i32
    scf.if %51 {
      %c0_32 = arith.constant 0 : index
      %c0_33 = arith.constant 0 : index
      %52 = vector.load %arg10[%c0_32, %c0_33] : memref<16x1xf32, #tpu.memory_space<vmem>>, vector<16x1xf32>
      %c0_34 = arith.constant 0 : index
      %c0_35 = arith.constant 0 : index
      %53 = vector.load %arg8[%c0_34, %c0_35] : memref<16x1xf32, #tpu.memory_space<vmem>>, vector<16x1xf32>
      %54 = arith.subf %52, %53 : vector<16x1xf32>
      %c0_36 = arith.constant 0 : index
      %c0_37 = arith.constant 0 : index
      %55 = vector.load %arg9[%c0_36, %c0_37] : memref<16x1xf32, #tpu.memory_space<vmem>>, vector<16x1xf32>
      %56 = math.log %55 : vector<16x1xf32>
      %57 = arith.subf %54, %56 : vector<16x1xf32>
      %c-100_i32 = arith.constant -100 : i32
      %58 = vector.broadcast %c-100_i32 : i32 to vector<16x1xi32>
      %59 = arith.cmpi ne, %11, %58 : vector<16x1xi32>
      %60 = arith.extui %59 : vector<16x1xi1> to vector<16x1xi32>
      %61 = arith.sitofp %60 : vector<16x1xi32> to vector<16x1xf32>
      %62 = arith.mulf %57, %61 : vector<16x1xf32>
      %63 = vector.shape_cast %62 : vector<16x1xf32> to vector<1x16x1xf32>
      %cst_38 = arith.constant dense<0.000000e+00> : vector<1xf32>
      %64 = vector.multi_reduction <add>, %63, %cst_38 [1, 2] : vector<1x16x1xf32> to vector<1xf32>
      %65 = vector.shape_cast %64 : vector<1xf32> to vector<1x1x1xf32>
      %66 = vector.extract %65[0, 0, 0] : f32 from vector<1x1x1xf32>
      %67 = vector.shape_cast %61 : vector<16x1xf32> to vector<1x16x1xf32>
      %cst_39 = arith.constant dense<0.000000e+00> : vector<1xf32>
      %68 = vector.multi_reduction <add>, %67, %cst_39 [1, 2] : vector<1x16x1xf32> to vector<1xf32>
      %69 = vector.shape_cast %68 : vector<1xf32> to vector<1x1x1xf32>
      %70 = vector.extract %69[0, 0, 0] : f32 from vector<1x1x1xf32>
      %c0_40 = arith.constant 0 : index
      %c0_41 = arith.constant 0 : index
      %71 = vector.load %arg11[%c0_40, %c0_41] : memref<1x1xf32, #tpu.memory_space<vmem>>, vector<1x1xf32>
      %72 = vector.extract %71[0, 0] : f32 from vector<1x1xf32>
      %73 = tpu.iota {dimensions = array<i32: 2>} : vector<1x1x128xi32>
      %c0_i32_42 = arith.constant 0 : i32
      %74 = vector.broadcast %c0_i32_42 : i32 to vector<1x1x128xi32>
      %75 = arith.cmpi eq, %73, %74 : vector<1x1x128xi32>
      %c1_i32_43 = arith.constant 1 : i32
      %76 = vector.broadcast %c1_i32_43 : i32 to vector<1x1x128xi32>
      %77 = arith.cmpi eq, %73, %76 : vector<1x1x128xi32>
      %c2_i32 = arith.constant 2 : i32
      %78 = vector.broadcast %c2_i32 : i32 to vector<1x1x128xi32>
      %79 = arith.cmpi eq, %73, %78 : vector<1x1x128xi32>
      %cst_44 = arith.constant 0.000000e+00 : f32
      %80 = vector.broadcast %72 : f32 to vector<1x1x128xf32>
      %81 = vector.broadcast %cst_44 : f32 to vector<1x1x128xf32>
      %82 = arith.select %79, %80, %81 : vector<1x1x128xi1>, vector<1x1x128xf32>
      %83 = vector.broadcast %70 : f32 to vector<1x1x128xf32>
      %84 = arith.select %77, %83, %82 : vector<1x1x128xi1>, vector<1x1x128xf32>
      %85 = vector.broadcast %66 : f32 to vector<1x1x128xf32>
      %86 = arith.select %75, %85, %84 : vector<1x1x128xi1>, vector<1x1x128xf32>
      %c0_45 = arith.constant 0 : index
      %c0_46 = arith.constant 0 : index
      %c0_47 = arith.constant 0 : index
      %87 = vector.load %arg7[%c0_45, %c0_46, %c0_47] : memref<1x1x128xf32, #tpu.memory_space<vmem>>, vector<1x1x128xf32>
      tpu.vector_store %arg7[%c0_45, %c0_46, %c0_47], %86 {strides = array<i32>} : memref<1x1x128xf32, #tpu.memory_space<vmem>>, vector<1x1x128xf32>,
    } else {
    }
    return
  }
  func.func @transform_0(%arg0: i32, %arg1: i32, %arg2: i32) -> (i32, i32, i32) {
    %c0_i32 = arith.constant 0 : i32
    %c0_i32_0 = arith.constant 0 : i32
    return %arg0, %arg1, %c0_i32 : i32, i32, i32
  }
  func.func @transform_1(%arg0: i32, %arg1: i32, %arg2: i32) -> (i32, i32) {
    %c0_i32 = arith.constant 0 : i32
    %c0_i32_0 = arith.constant 0 : i32
    return %arg2, %c0_i32 : i32, i32
  }
  func.func @transform_2(%arg0: i32, %arg1: i32, %arg2: i32) -> (i32, i32) {
    %c0_i32 = arith.constant 0 : i32
    %c0_i32_0 = arith.constant 0 : i32
    return %c0_i32, %arg2 : i32, i32
  }
  func.func @transform_3(%arg0: i32, %arg1: i32, %arg2: i32) -> (i32, i32, i32) {
    %c0_i32 = arith.constant 0 : i32
    %c0_i32_0 = arith.constant 0 : i32
    return %arg0, %arg1, %c0_i32 : i32, i32, i32
  }
  func.func @transform_4(%arg0: i32, %arg1: i32, %arg2: i32) -> (i32, i32, i32) {
    %c0_i32 = arith.constant 0 : i32
    %c0_i32_0 = arith.constant 0 : i32
    return %arg0, %arg1, %c0_i32 : i32, i32, i32
  }
}

</mosaic_0001>

<bundles_post_ra>
// kernel: tpu_custom_call.1
= control target key start
LH: loop header
LB: loop body
LE: loop exit
PB: predicated region body
PF: predicated region fallthrough
CT: control target
= control target key end

     0   :  { %s3025_s0 = inlined_call_operand.vmem [shape: f32[4,16,64], index: 0, kind: input, shape index: {}]   ;;  %s3026_s1 = inlined_call_operand.vmem [shape: f32[2048,64], index: 1, kind: input, shape index: {}]   ;;  %s3027_s2 = inlined_call_operand.vmem [shape: f32[1,2048], index: 2, kind: input, shape index: {}]   ;;  %s3028_s3 = inlined_call_operand.vmem [shape: s32[4,16,1], index: 3, kind: input, shape index: {}]   ;;  %s3029_s4 = inlined_call_operand.hbm [shape: f32[4,1,128], index: 4, kind: output, shape index: {}]  }
   0x1   :  { %3031 = sst [smem:[#allocation11_spill]] %s3025_s0 }
   0x2   :  { %9 = vsyncpa [#allocation7], 0 }
   0x3   :  { %11 = vsyncpa [#allocation7 + $0x1], 0  ;;  %s2356_s15 = smov 0   ;;  %s2358_s16 = smov 0  }
   0x4   :  { %s2360_s17 = smov 0   ;;  %s2362_s18 = smov 0  }
   0x5   :  { %s2364_s19 = smov 0   ;;  %s2366_s20 = smov 0  }
   0x6   :  { %s2368_s21 = smov 0   ;;  %s2370_s22 = smov 0  }
   0x7 LB: > { %s1611_s23 = sadd.s32 4294967295, %s2324_s22   ;;  %s1612_s24 = sadd.s32 4294967294, %s2324_s22   ;;  %s2324_s22 = sphi %s2370_s22, %s17_s22   ;;  %s2320_s21 = sphi %s2368_s21, %s3049_s21   ;;  %s2316_s20 = sphi %s2366_s20, %s3048_s20   ;;  %s2312_s19 = sphi %s2364_s19, %s3047_s19   ;;  %s2308_s18 = sphi %s2362_s18, %s3046_s18   ;;  %s2304_s17 = sphi %s2360_s17, %s3045_s17   ;;  %s2300_s16 = sphi %s2358_s16, %s3044_s16   ;;  %s2296_s15 = sphi %s2356_s15, %s3043_s15  }
   0x8   : > { %s29_s25 = sadd.s32 1, %s2316_s20  ;;  %s36_s26 = sadd.s32 1, %s2320_s21 }
   0x9   : > { %p30_p0 = scmp.ge.s32.totalorder %s29_s25, 2  ;;  %p163_p1 = scmp.ne.s32.totalorder %s2304_s17, %s2300_s16 }
   0xa   : > { %p164_p2 = scmp.eq.s32.totalorder %s1611_s23, 7  ;;  %p169_p4 = scmp.ne.s32.totalorder %s2300_s16, %s2296_s15 }
   0xb   : > { %s3051_s25 = smov (%p30_p0, %s29_s25), 0  ;;  %s3053_s26 = smov (!%p30_p0, %s36_s26), %s2320_s21 }
   0xc   : > { %3032 = sst [smem:[#allocation9_spill]] %s3051_s25  ;;  %p2405_p3 = por %p164_p2, %p163_p1 }
   0xd   : > { %p38_p5 = scmp.ge.s32.totalorder %s3053_s26, 4  ;;  %p170_p6 = scmp.eq.s32.totalorder %s1612_s24, 7 }
   0xe   : > { %p1615_p7 = scmp.ge.s32.totalorder %s2324_s22, 1  ;;  %p231_p8 = scmp.lt.s32.totalorder %s2324_s22, 9 }
   0xf   : > { %s3055_s26 = smov (%p38_p5, %s3053_s26), 0  ;;  %p2415_p9 = por %p170_p6, %p169_p4 }
  0x10   : > { %3034 = sst [smem:[#allocation10_spill]] %s3055_s26  ;;  %p232_p10 = pnand %p1615_p7, %p231_p8 }
  0x11   : > { %s148_s29 = ssub.s32 %s2320_s21, %s3055_s26  ;;  %s153_s30 = sadd.s32 1, %s2304_s17 }
  0x12   : > { %p151_p11 = scmp.eq.s32.totalorder %s148_s29, 0  ;;  %235 = sbr.rel (%p232_p10) target bundleno = 1108 (0x454), region = 36 }
  0x13   : > { %p279_p12 = scmp.lt.s32.totalorder (!%p232_p10), %s2312_s19, 3  ;;  %s1618_s7 = sshll.u32 (!%p232_p10), %s2308_s18, 7 }
  0x14   : > { %s2423_s5 = scalar_select %p151_p11, %s2304_s17, %s153_s30  }
  0x15   : > { %p289_p13 = scmp.lt.s32.totalorder (!%p232_p10), %s1618_s7, 255  ;;  %s1620_s9 = sshll.u32 (!%p232_p10), %s2308_s18, 3 }
  0x16   : > { %p295_p0 = scmp.lt.s32.totalorder (!%p232_p10), %s1620_s9, 15  ;;  %s3036_s0 = sld [smem:[#allocation11_spill]] (!%p232_p10) }
  0x17   : > { %s3037_s12 = sand.u32 (!%p232_p10), 1, %s2300_s16   ;;  %p1623_p1 = scmp.ne.s32.totalorder (!%p232_p10), %s2308_s18, 0 }
  0x19   : > { %s280_s8 = scalar_select %p279_p12, %s2312_s19, 3 }
  0x1a   : > { %s3057_s7 = smov (!%p289_p13, %s1618_s7), 255  ;;  %s3059_s9 = smov (!%p295_p0, %s1620_s9), 15 }
  0x1b   : > { %s1767_s10 = sshll.u32 %s280_s8, 4  ;;  %s1619_s29 = sshll.u32 %s3057_s7, 3  ;;  %vm313_vm0 = vcmask (!%p1623_p1), 7168   ;;  %vm320_vm1 = vcmask (!%p1623_p1), 0   ;;  %v2326_v0 = vmov (!%p1623_p1), -inf   ;;  %v2327_v1 = vmov (!%p1623_p1), 0.0  }
  0x1c   : > { %s2433_s13 = scalar_lea.vmem %s3036_s0, %s1767_s10  ;;  %s2438_s24 = scalar_lea.vmem %s3028_s3, %s1767_s10  ;;  %314 = vst.msk [vmem:[#allocation2] sm:$0xff] (!%p1623_p1), %vm313_vm0, %v2326_v0  ;;  %315 = vst.msk [vmem:[#allocation2 + $0x8] sm:$0xff] (!%p1623_p1), %vm313_vm0, %v2326_v0 }
  0x1d   : > { %s2445_s8 = scalar_lea.vmem %s3026_s1, %s1619_s29  ;;  %s297_s11 = scalar_lea.vmem %s3027_s2, %s3059_s9  ;;  %316 = vst.msk [vmem:[#allocation3] sm:$0xff] (!%p1623_p1), %vm313_vm0, %v2327_v1  ;;  %317 = vst.msk [vmem:[#allocation3 + $0x8] sm:$0xff] (!%p1623_p1), %vm313_vm0, %v2327_v1 }
  0x1e   : > { %s2453_s0 = scalar_lea.vmem [#allocation6], %s3037_s12  ;;  %312 = sbr.rel (%p1623_p1) target bundleno = 37 (0x25), region = 40  ;;  %318 = vst.msk [vmem:[#allocation4] sm:$0xff] (!%p1623_p1), %vm313_vm0, %v2327_v1  ;;  %319 = vst.msk [vmem:[#allocation4 + $0x8] sm:$0xff] (!%p1623_p1), %vm313_vm0, %v2327_v1 }
  0x1f   : > { %321 = vst.msk [vmem:[#allocation5] sm:$0x1] (!%p1623_p1), %vm320_vm1, %v2327_v1 }
  0x25 PF: > { %v340_v2 = vld [vmem:[%s2445_s8 + $0x80] sm:$0xff]  ;;  %v341_v3 = vld [vmem:[%s2445_s8 + $0x88] sm:$0xff]  ;;  %vm494_vm2 = vcmask 523264   ;;  %v342_v15 = vld [vmem:[%s2445_s8 + $0x90] sm:$0xff]  ;;  %v2328_v6 = vmov 0   ;;  %vm1274_vm4 = vcmask 7168  }
  0x26   : > { %v372_v4 = vld [vmem:[%s2445_s8 + $0x180] sm:$0xff]  ;;  %v1913_v5 = vpack.c.bf16 %v341_v3, %v340_v2  ;;  %vm2461_vm3 = vmpackc.low %vm494_vm2, %vm494_vm2  ;;  %v373_v7 = vld [vmem:[%s2445_s8 + $0x188] sm:$0xff]  ;;  %2189 = vset.pattern.permute.xlu0 %v2328_v6  ;;  %2188 = vset.pattern.permute.xlu1 %v2328_v6  ;;  %s1760_s6 = sshll.u32 %s2308_s18, 10  ;;  %p1761_p2 = scmp.ne.s32.totalorder %s2308_s18, 1 }
  0x27   : > { %v324_v8 = vld [vmem:[%s2445_s8] sm:$0xff]  ;;  %v1961_v9 = vpack.c.bf16 %v373_v7, %v372_v4  ;;  %v325_v10 = vld [vmem:[%s2445_s8 + $0x8] sm:$0xff]  ;;  %v343_v16 = vld [vmem:[%s2445_s8 + $0x98] sm:$0xff] }
  0x28   : > { %v356_v11 = vld [vmem:[%s2445_s8 + $0x100] sm:$0xff]  ;;  %v357_v12 = vld [vmem:[%s2445_s8 + $0x108] sm:$0xff]  ;;  %1915 = vmatprep.subr.msk.bf16.mxu0 %vm2461_vm3, %v1913_v5  ;;  %v1916_v13 = vpack.c.bf16 %v325_v10, %v324_v8  ;;  %v374_v17 = vld [vmem:[%s2445_s8 + $0x190] sm:$0xff]  ;;  %v1919_v18 = vpack.c.bf16 %v343_v16, %v342_v15 }
  0x29   : > { %v1964_v14 = vpack.c.bf16 %v357_v12, %v356_v11  ;;  %1963 = vmatprep.subr.msk.bf16.mxu1 %vm2461_vm3, %v1961_v9  ;;  %v375_v19 = vld [vmem:[%s2445_s8 + $0x198] sm:$0xff]  ;;  %v326_v21 = vld [vmem:[%s2445_s8 + $0x10] sm:$0xff]  ;;  %v344_v25 = vld [vmem:[%s2445_s8 + $0xa0] sm:$0xff] }
  0x2a   : > { %1918 = vmatpush3.bf16.xpose.msk.msra.mxu0 %vm2461_vm3, %v1916_v13  ;;  %v1967_v20 = vpack.c.bf16 %v375_v19, %v374_v17  ;;  %v327_v22 = vld [vmem:[%s2445_s8 + $0x18] sm:$0xff]  ;;  %v358_v23 = vld [vmem:[%s2445_s8 + $0x110] sm:$0xff]  ;;  %v345_v26 = vld [vmem:[%s2445_s8 + $0xa8] sm:$0xff] }
  0x2b   : > { %1966 = vmatpush3.bf16.xpose.msk.msra.mxu1 %vm2461_vm3, %v1964_v14  ;;  %1921 = vmatprep.subr.msk.bf16.mxu0 %vm2461_vm3, %v1919_v18  ;;  %v359_v24 = vld [vmem:[%s2445_s8 + $0x118] sm:$0xff]  ;;  %v376_v27 = vld [vmem:[%s2445_s8 + $0x1a0] sm:$0xff]  ;;  %v377_v28 = vld [vmem:[%s2445_s8 + $0x1a8] sm:$0xff]  ;;  %v1922_v29 = vpack.c.bf16 %v327_v22, %v326_v21  ;;  %v1925_v31 = vpack.c.bf16 %v345_v26, %v344_v25 }
  0x2c   : > { %1969 = vmatprep.subr.msk.bf16.mxu1 %vm2461_vm3, %v1967_v20  ;;  %v1970_v30 = vpack.c.bf16 %v359_v24, %v358_v23  ;;  %v1973_v32 = vpack.c.bf16 %v377_v28, %v376_v27  ;;  %v328_v33 = vld [vmem:[%s2445_s8 + $0x20] sm:$0xff]  ;;  %v329_v34 = vld [vmem:[%s2445_s8 + $0x28] sm:$0xff]  ;;  %v346_v37 = vld [vmem:[%s2445_s8 + $0xb0] sm:$0xff] }
  0x2d   : > { %v360_v35 = vld [vmem:[%s2445_s8 + $0x120] sm:$0xff]  ;;  %v361_v36 = vld [vmem:[%s2445_s8 + $0x128] sm:$0xff]  ;;  %v347_v38 = vld [vmem:[%s2445_s8 + $0xb8] sm:$0xff]  ;;  %v1928_v41 = vpack.c.bf16 %v329_v34, %v328_v33 }
  0x2e   : > { %v378_v39 = vld [vmem:[%s2445_s8 + $0x1b0] sm:$0xff]  ;;  %v379_v40 = vld [vmem:[%s2445_s8 + $0x1b8] sm:$0xff]  ;;  %v1976_v42 = vpack.c.bf16 %v361_v36, %v360_v35  ;;  %v1931_v43 = vpack.c.bf16 %v347_v38, %v346_v37  ;;  %v2517_v47 = vld [vmem:[%s2433_s13] sm:$0xff] }
  0x2f   : > { %v1979_v44 = vpack.c.bf16 %v379_v40, %v378_v39  ;;  %v330_v45 = vld [vmem:[%s2445_s8 + $0x30] sm:$0xff]  ;;  %v331_v46 = vld [vmem:[%s2445_s8 + $0x38] sm:$0xff]  ;;  %v348_v50 = vld [vmem:[%s2445_s8 + $0xc0] sm:$0xff]  ;;  %1801 = vmatprep.mubr.msk.f32.mxu0 %vm494_vm2, %v2517_v47  ;;  %1837 = vmatprep.mubr.msk.f32.mxu1 %vm494_vm2, %v2517_v47 }
  0x30   : > { %v362_v48 = vld [vmem:[%s2445_s8 + $0x130] sm:$0xff]  ;;  %v363_v49 = vld [vmem:[%s2445_s8 + $0x138] sm:$0xff]  ;;  %v349_v51 = vld [vmem:[%s2445_s8 + $0xc8] sm:$0xff]  ;;  %v1934_v54 = vpack.c.bf16 %v331_v46, %v330_v45 }
  0x31   : > { %v380_v52 = vld [vmem:[%s2445_s8 + $0x1c0] sm:$0xff]  ;;  %v381_v53 = vld [vmem:[%s2445_s8 + $0x1c8] sm:$0xff]  ;;  %v1982_v55 = vpack.c.bf16 %v363_v49, %v362_v48  ;;  %v1937_v56 = vpack.c.bf16 %v349_v51, %v348_v50  ;;  %v350_v62 = vld [vmem:[%s2445_s8 + $0xd0] sm:$0xff] }
  0x32   : > { %1924 = vmatpush3.bf16.xpose.msk.msra.mxu0 %vm2461_vm3, %v1922_v29  ;;  %v1985_v57 = vpack.c.bf16 %v381_v53, %v380_v52  ;;  %v332_v58 = vld [vmem:[%s2445_s8 + $0x40] sm:$0xff]  ;;  %v333_v59 = vld [vmem:[%s2445_s8 + $0x48] sm:$0xff]  ;;  %v351_v63 = vld [vmem:[%s2445_s8 + $0xd8] sm:$0xff] }
  0x33   : > { %1972 = vmatpush3.bf16.xpose.msk.msra.mxu1 %vm2461_vm3, %v1970_v30  ;;  %1927 = vmatprep.subr.msk.bf16.mxu0 %vm2461_vm3, %v1925_v31  ;;  %v364_v60 = vld [vmem:[%s2445_s8 + $0x140] sm:$0xff]  ;;  %v365_v61 = vld [vmem:[%s2445_s8 + $0x148] sm:$0xff]  ;;  %v382_v0 = vld [vmem:[%s2445_s8 + $0x1d0] sm:$0xff]  ;;  %v1940_v2 = vpack.c.bf16 %v333_v59, %v332_v58  ;;  %v1943_v4 = vpack.c.bf16 %v351_v63, %v350_v62 }
  0x34   : > { %1975 = vmatprep.subr.msk.bf16.mxu1 %vm2461_vm3, %v1973_v32  ;;  %v383_v1 = vld [vmem:[%s2445_s8 + $0x1d8] sm:$0xff]  ;;  %v1988_v3 = vpack.c.bf16 %v365_v61, %v364_v60  ;;  %v334_v7 = vld [vmem:[%s2445_s8 + $0x50] sm:$0xff]  ;;  %v352_v11 = vld [vmem:[%s2445_s8 + $0xe0] sm:$0xff] }
  0x35   : > { %v1991_v5 = vpack.c.bf16 %v383_v1, %v382_v0  ;;  %v335_v8 = vld [vmem:[%s2445_s8 + $0x58] sm:$0xff]  ;;  %v366_v9 = vld [vmem:[%s2445_s8 + $0x150] sm:$0xff]  ;;  %v353_v12 = vld [vmem:[%s2445_s8 + $0xe8] sm:$0xff] }
  0x36   : > { %v367_v10 = vld [vmem:[%s2445_s8 + $0x158] sm:$0xff]  ;;  %v384_v13 = vld [vmem:[%s2445_s8 + $0x1e0] sm:$0xff]  ;;  %v385_v14 = vld [vmem:[%s2445_s8 + $0x1e8] sm:$0xff]  ;;  %v1946_v15 = vpack.c.bf16 %v335_v8, %v334_v7  ;;  %v1949_v17 = vpack.c.bf16 %v353_v12, %v352_v11 }
  0x37   : > { %v1994_v16 = vpack.c.bf16 %v367_v10, %v366_v9  ;;  %v1997_v18 = vpack.c.bf16 %v385_v14, %v384_v13  ;;  %v336_v19 = vld [vmem:[%s2445_s8 + $0x60] sm:$0xff]  ;;  %v337_v20 = vld [vmem:[%s2445_s8 + $0x68] sm:$0xff]  ;;  %v354_v23 = vld [vmem:[%s2445_s8 + $0xf0] sm:$0xff] }
  0x38   : > { %v368_v21 = vld [vmem:[%s2445_s8 + $0x160] sm:$0xff]  ;;  %v369_v22 = vld [vmem:[%s2445_s8 + $0x168] sm:$0xff]  ;;  %v355_v24 = vld [vmem:[%s2445_s8 + $0xf8] sm:$0xff]  ;;  %v1952_v27 = vpack.c.bf16 %v337_v20, %v336_v19 }
  0x39   : > { %v386_v25 = vld [vmem:[%s2445_s8 + $0x1f0] sm:$0xff]  ;;  %v387_v26 = vld [vmem:[%s2445_s8 + $0x1f8] sm:$0xff]  ;;  %v2000_v28 = vpack.c.bf16 %v369_v22, %v368_v21  ;;  %v1955_v29 = vpack.c.bf16 %v355_v24, %v354_v23  ;;  %v404_v35 = vld [vmem:[%s2445_s8 + $0x280] sm:$0xff] }
  0x3a   : > { %1930 = vmatpush3.bf16.xpose.msk.msra.mxu0 %vm2461_vm3, %v1928_v41  ;;  %v2003_v30 = vpack.c.bf16 %v387_v26, %v386_v25  ;;  %v338_v31 = vld [vmem:[%s2445_s8 + $0x70] sm:$0xff]  ;;  %v339_v32 = vld [vmem:[%s2445_s8 + $0x78] sm:$0xff]  ;;  %v405_v36 = vld [vmem:[%s2445_s8 + $0x288] sm:$0xff] }
  0x3b   : > { %1978 = vmatpush3.bf16.xpose.msk.msra.mxu1 %vm2461_vm3, %v1976_v42  ;;  %1933 = vmatprep.subr.msk.bf16.mxu0 %vm2461_vm3, %v1931_v43  ;;  %v370_v33 = vld [vmem:[%s2445_s8 + $0x170] sm:$0xff]  ;;  %v371_v34 = vld [vmem:[%s2445_s8 + $0x178] sm:$0xff]  ;;  %v436_v37 = vld [vmem:[%s2445_s8 + $0x380] sm:$0xff]  ;;  %v1958_v39 = vpack.c.bf16 %v339_v32, %v338_v31  ;;  %v2009_v41 = vpack.c.bf16 %v405_v36, %v404_v35 }
  0x3c   : > { %1981 = vmatprep.subr.msk.bf16.mxu1 %vm2461_vm3, %v1979_v44  ;;  %v437_v38 = vld [vmem:[%s2445_s8 + $0x388] sm:$0xff]  ;;  %v2006_v40 = vpack.c.bf16 %v371_v34, %v370_v33  ;;  %v388_v43 = vld [vmem:[%s2445_s8 + $0x200] sm:$0xff]  ;;  %v406_v48 = vld [vmem:[%s2445_s8 + $0x290] sm:$0xff] }
  0x3d   : > { %v2057_v42 = vpack.c.bf16 %v437_v38, %v436_v37  ;;  %v389_v44 = vld [vmem:[%s2445_s8 + $0x208] sm:$0xff]  ;;  %v420_v45 = vld [vmem:[%s2445_s8 + $0x300] sm:$0xff]  ;;  %v407_v49 = vld [vmem:[%s2445_s8 + $0x298] sm:$0xff] }
  0x3e   : > { %v421_v46 = vld [vmem:[%s2445_s8 + $0x308] sm:$0xff]  ;;  %v438_v50 = vld [vmem:[%s2445_s8 + $0x390] sm:$0xff]  ;;  %v439_v51 = vld [vmem:[%s2445_s8 + $0x398] sm:$0xff]  ;;  %v2012_v52 = vpack.c.bf16 %v389_v44, %v388_v43 }
  0x3f   : > { %v2060_v53 = vpack.c.bf16 %v421_v46, %v420_v45  ;;  %v391_v58 = vld [vmem:[%s2445_s8 + $0x218] sm:$0xff]  ;;  %v422_v59 = vld [vmem:[%s2445_s8 + $0x310] sm:$0xff]  ;;  %v408_v61 = vld [vmem:[%s2445_s8 + $0x2a0] sm:$0xff] }
  0x40   : > { %v423_v60 = vld [vmem:[%s2445_s8 + $0x318] sm:$0xff]  ;;  %v409_v62 = vld [vmem:[%s2445_s8 + $0x2a8] sm:$0xff]  ;;  %v440_v63 = vld [vmem:[%s2445_s8 + $0x3a0] sm:$0xff] }
  0x41   : > { %v441_v0 = vld [vmem:[%s2445_s8 + $0x3a8] sm:$0xff]  ;;  %v424_v8 = vld [vmem:[%s2445_s8 + $0x320] sm:$0xff]  ;;  %v410_v10 = vld [vmem:[%s2445_s8 + $0x2b0] sm:$0xff] }
  0x42   : > { %1936 = vmatpush3.bf16.xpose.msk.msra.mxu0 %vm2461_vm3, %v1934_v54  ;;  %v2015_v54 = vpack.c.bf16 %v407_v49, %v406_v48  ;;  %v393_v7 = vld [vmem:[%s2445_s8 + $0x228] sm:$0xff]  ;;  %v411_v11 = vld [vmem:[%s2445_s8 + $0x2b8] sm:$0xff]  ;;  %v442_v12 = vld [vmem:[%s2445_s8 + $0x3b0] sm:$0xff] }
  0x43   : > { %1984 = vmatpush3.bf16.xpose.msk.msra.mxu1 %vm2461_vm3, %v1982_v55  ;;  %1939 = vmatprep.subr.msk.bf16.mxu0 %vm2461_vm3, %v1937_v56  ;;  %v2063_v55 = vpack.c.bf16 %v439_v51, %v438_v50  ;;  %v2618_v56 = vld [vmem:[%s2433_s13 + $0x8] sm:$0xff]  ;;  %v443_v13 = vld [vmem:[%s2445_s8 + $0x3b8] sm:$0xff]  ;;  %v426_v20 = vld [vmem:[%s2445_s8 + $0x330] sm:$0xff] }
  0x44   : > { %1987 = vmatprep.subr.msk.bf16.mxu1 %vm2461_vm3, %v1985_v57  ;;  %v390_v57 = vld [vmem:[%s2445_s8 + $0x210] sm:$0xff]  ;;  %v425_v9 = vld [vmem:[%s2445_s8 + $0x328] sm:$0xff]  ;;  %v395_v19 = vld [vmem:[%s2445_s8 + $0x238] sm:$0xff] }
  0x45   : > { %v2018_v1 = vpack.c.bf16 %v391_v58, %v390_v57  ;;  %v427_v21 = vld [vmem:[%s2445_s8 + $0x338] sm:$0xff]  ;;  %v412_v22 = vld [vmem:[%s2445_s8 + $0x2c0] sm:$0xff]  ;;  %v413_v23 = vld [vmem:[%s2445_s8 + $0x2c8] sm:$0xff] }
  0x46   : > { %v444_v24 = vld [vmem:[%s2445_s8 + $0x3c0] sm:$0xff]  ;;  %v445_v25 = vld [vmem:[%s2445_s8 + $0x3c8] sm:$0xff]  ;;  %v414_v34 = vld [vmem:[%s2445_s8 + $0x2d0] sm:$0xff] }
  0x47   : > { %v397_v31 = vld [vmem:[%s2445_s8 + $0x248] sm:$0xff]  ;;  %v428_v32 = vld [vmem:[%s2445_s8 + $0x340] sm:$0xff]  ;;  %v415_v35 = vld [vmem:[%s2445_s8 + $0x2d8] sm:$0xff] }
  0x48   : > { %v429_v33 = vld [vmem:[%s2445_s8 + $0x348] sm:$0xff]  ;;  %v446_v36 = vld [vmem:[%s2445_s8 + $0x3d0] sm:$0xff]  ;;  %v447_v37 = vld [vmem:[%s2445_s8 + $0x3d8] sm:$0xff] }
  0x49   : > { %v399_v43 = vld [vmem:[%s2445_s8 + $0x258] sm:$0xff]  ;;  %v430_v44 = vld [vmem:[%s2445_s8 + $0x350] sm:$0xff]  ;;  %v416_v46 = vld [vmem:[%s2445_s8 + $0x2e0] sm:$0xff] }
  0x4a   : > { %1942 = vmatpush3.bf16.xpose.msk.msra.mxu0 %vm2461_vm3, %v1940_v2  ;;  %v2066_v2 = vpack.c.bf16 %v423_v60, %v422_v59  ;;  %v431_v45 = vld [vmem:[%s2445_s8 + $0x358] sm:$0xff]  ;;  %v417_v48 = vld [vmem:[%s2445_s8 + $0x2e8] sm:$0xff]  ;;  %v448_v49 = vld [vmem:[%s2445_s8 + $0x3e0] sm:$0xff] }
  0x4b   : > { %1990 = vmatpush3.bf16.xpose.msk.msra.mxu1 %vm2461_vm3, %v1988_v3  ;;  %1945 = vmatprep.subr.msk.bf16.mxu0 %vm2461_vm3, %v1943_v4  ;;  %v2021_v3 = vpack.c.bf16 %v409_v62, %v408_v61  ;;  %v2069_v4 = vpack.c.bf16 %v441_v0, %v440_v63  ;;  %v449_v50 = vld [vmem:[%s2445_s8 + $0x3e8] sm:$0xff]  ;;  %v432_v58 = vld [vmem:[%s2445_s8 + $0x360] sm:$0xff]  ;;  %v418_v60 = vld [vmem:[%s2445_s8 + $0x2f0] sm:$0xff] }
  0x4c   : > { %1993 = vmatprep.subr.msk.bf16.mxu1 %vm2461_vm3, %v1991_v5  ;;  %v392_v5 = vld [vmem:[%s2445_s8 + $0x220] sm:$0xff]  ;;  %v401_v57 = vld [vmem:[%s2445_s8 + $0x268] sm:$0xff]  ;;  %v419_v61 = vld [vmem:[%s2445_s8 + $0x2f8] sm:$0xff] }
  0x4d   : > { %v2024_v14 = vpack.c.bf16 %v393_v7, %v392_v5  ;;  %v433_v59 = vld [vmem:[%s2445_s8 + $0x368] sm:$0xff]  ;;  %v450_v62 = vld [vmem:[%s2445_s8 + $0x3f0] sm:$0xff]  ;;  %v451_v63 = vld [vmem:[%s2445_s8 + $0x3f8] sm:$0xff] }
  0x4e   : > { %v403_v5 = vld [vmem:[%s2445_s8 + $0x278] sm:$0xff]  ;;  %v434_v7 = vld [vmem:[%s2445_s8 + $0x370] sm:$0xff] }
  0x52   : > { %1948 = vmatpush3.bf16.xpose.msk.msra.mxu0 %vm2461_vm3, %v1946_v15  ;;  %v2072_v15 = vpack.c.bf16 %v425_v9, %v424_v8  ;;  %v435_v8 = vld [vmem:[%s2445_s8 + $0x378] sm:$0xff] }
  0x53   : > { %1996 = vmatpush3.bf16.xpose.msk.msra.mxu1 %vm2461_vm3, %v1994_v16  ;;  %1951 = vmatprep.subr.msk.bf16.mxu0 %vm2461_vm3, %v1949_v17  ;;  %v2027_v16 = vpack.c.bf16 %v411_v11, %v410_v10  ;;  %v2075_v17 = vpack.c.bf16 %v443_v13, %v442_v12  ;;  %v2102_v10 = vpack.c.bf16 %v435_v8, %v434_v7 }
  0x54   : > { %1999 = vmatprep.subr.msk.bf16.mxu1 %vm2461_vm3, %v1997_v18  ;;  %v394_v18 = vld [vmem:[%s2445_s8 + $0x230] sm:$0xff] }
  0x55   : > { %v2030_v26 = vpack.c.bf16 %v395_v19, %v394_v18  ;;  %v454_v18 = vlaneseq }
  0x57   : > { %v455_v19 = vshrl.u32 %v454_v18, 7 }
  0x5a   : > { %1954 = vmatpush3.bf16.xpose.msk.msra.mxu0 %vm2461_vm3, %v1952_v27  ;;  %v2078_v27 = vpack.c.bf16 %v427_v21, %v426_v20  ;;  %v456_v20 = vsub.s32 0, %v455_v19  ;;  %v464_v21 = vsub.s32 2, %v455_v19 }
  0x5b   : > { %2002 = vmatpush3.bf16.xpose.msk.msra.mxu1 %vm2461_vm3, %v2000_v28  ;;  %1957 = vmatprep.subr.msk.bf16.mxu0 %vm2461_vm3, %v1955_v29  ;;  %v2033_v28 = vpack.c.bf16 %v413_v23, %v412_v22  ;;  %v2081_v29 = vpack.c.bf16 %v445_v25, %v444_v24  ;;  %v460_v22 = vsub.s32 1, %v455_v19  ;;  %v468_v23 = vsub.s32 3, %v455_v19 }
  0x5c   : > { %2005 = vmatprep.subr.msk.bf16.mxu1 %vm2461_vm3, %v2003_v30  ;;  %v396_v30 = vld [vmem:[%s2445_s8 + $0x240] sm:$0xff] }
  0x5d   : > { %v2036_v38 = vpack.c.bf16 %v397_v31, %v396_v30  ;;  %v476_v30 = vsub.s32 5, %v455_v19  ;;  %v484_v31 = vsub.s32 7, %v455_v19 }
  0x62   : > { %1960 = vmatpush3.bf16.xpose.msk.msra.mxu0 %vm2461_vm3, %v1958_v39  ;;  %v2084_v39 = vpack.c.bf16 %v429_v33, %v428_v32 }
  0x63   : > { %2008 = vmatpush3.bf16.xpose.msk.msra.mxu1 %vm2461_vm3, %v2006_v40  ;;  %2011 = vmatprep.subr.msk.bf16.mxu0 %vm2461_vm3, %v2009_v41  ;;  %v2039_v40 = vpack.c.bf16 %v415_v35, %v414_v34  ;;  %v2087_v41 = vpack.c.bf16 %v447_v37, %v446_v36 }
  0x64   : > { %2059 = vmatprep.subr.msk.bf16.mxu1 %vm2461_vm3, %v2057_v42  ;;  %v398_v42 = vld [vmem:[%s2445_s8 + $0x250] sm:$0xff] }
  0x65   : > { %v2042_v51 = vpack.c.bf16 %v399_v43, %v398_v42 }
  0x69   : > { %1802 = vmatmul.mubr.msk.f32.vlgmr.msra.gmra.mrb[0].mxu0 %vm494_vm2, %v2517_v47 }
  0x6a   : > { %1838 = vmatmul.mubr.msk.f32.vlgmr.msra.gmra.mrb[0].mxu1 %vm494_vm2, %v2517_v47  ;;  %2014 = vmatpush3.bf16.xpose.msk.msra.mxu0 %vm2461_vm3, %v2012_v52  ;;  %v2090_v52 = vpack.c.bf16 %v431_v45, %v430_v44 }
  0x6b   : > { %2062 = vmatpush3.bf16.xpose.msk.msra.mxu1 %vm2461_vm3, %v2060_v53  ;;  %2017 = vmatprep.subr.msk.bf16.mxu0 %vm2461_vm3, %v2015_v54  ;;  %v2045_v53 = vpack.c.bf16 %v417_v48, %v416_v46  ;;  %v2093_v54 = vpack.c.bf16 %v449_v50, %v448_v49 }
  0x6c   : > { %2065 = vmatprep.subr.msk.bf16.mxu1 %vm2461_vm3, %v2063_v55  ;;  %1803 = vmatprep.mubr.msk.f32.mxu0 %vm494_vm2, %v2618_v56  ;;  %v400_v55 = vld [vmem:[%s2445_s8 + $0x260] sm:$0xff] }
  0x6d   : > { %1839 = vmatprep.mubr.msk.f32.mxu1 %vm494_vm2, %v2618_v56  ;;  %1804 = vmatmul.mubr.msk.f32.gmra.mrb[2].mxu0 %vm494_vm2, %v2618_v56  ;;  %v2048_v0 = vpack.c.bf16 %v401_v57, %v400_v55 }
  0x6e   : > { %1840 = vmatmul.mubr.msk.f32.gmra.mrb[2].mxu1 %vm494_vm2, %v2618_v56  ;;  %1873 = vmatprep.mubr.msk.f32.mxu0 %vm494_vm2, %v2517_v47 }
  0x6f   : > { %1909 = vmatprep.mubr.msk.f32.mxu1 %vm494_vm2, %v2517_v47 }
  0x72   : > { %2020 = vmatpush3.bf16.xpose.msk.msra.mxu0 %vm2461_vm3, %v2018_v1  ;;  %v2096_v1 = vpack.c.bf16 %v433_v59, %v432_v58 }
  0x73   : > { %2068 = vmatpush3.bf16.xpose.msk.msra.mxu1 %vm2461_vm3, %v2066_v2  ;;  %2023 = vmatprep.subr.msk.bf16.mxu0 %vm2461_vm3, %v2021_v3  ;;  %v2051_v2 = vpack.c.bf16 %v419_v61, %v418_v60  ;;  %v2099_v3 = vpack.c.bf16 %v451_v63, %v450_v62 }
  0x74   : > { %2071 = vmatprep.subr.msk.bf16.mxu1 %vm2461_vm3, %v2069_v4  ;;  %v402_v4 = vld [vmem:[%s2445_s8 + $0x270] sm:$0xff] }
  0x75   : > { %v2054_v9 = vpack.c.bf16 %v403_v5, %v402_v4 }
  0x7a   : > { %2026 = vmatpush3.bf16.xpose.msk.msra.mxu0 %vm2461_vm3, %v2024_v14 }
  0x7b   : > { %2074 = vmatpush3.bf16.xpose.msk.msra.mxu1 %vm2461_vm3, %v2072_v15  ;;  %2029 = vmatprep.subr.msk.bf16.mxu0 %vm2461_vm3, %v2027_v16 }
  0x7c   : > { %2077 = vmatprep.subr.msk.bf16.mxu1 %vm2461_vm3, %v2075_v17 }
  0x82   : > { %2032 = vmatpush3.bf16.xpose.msk.msra.mxu0 %vm2461_vm3, %v2030_v26 }
  0x83   : > { %2080 = vmatpush3.bf16.xpose.msk.msra.mxu1 %vm2461_vm3, %v2078_v27  ;;  %2035 = vmatprep.subr.msk.bf16.mxu0 %vm2461_vm3, %v2033_v28  ;;  %v472_v28 = vsub.s32 4, %v455_v19 }
  0x84   : > { %2083 = vmatprep.subr.msk.bf16.mxu1 %vm2461_vm3, %v2081_v29  ;;  %v480_v29 = vsub.s32 6, %v455_v19 }
  0x8a   : > { %2038 = vmatpush3.bf16.xpose.msk.msra.mxu0 %vm2461_vm3, %v2036_v38 }
  0x8b   : > { %2086 = vmatpush3.bf16.xpose.msk.msra.mxu1 %vm2461_vm3, %v2084_v39  ;;  %2041 = vmatprep.subr.msk.bf16.mxu0 %vm2461_vm3, %v2039_v40 }
  0x8c   : > { %2089 = vmatprep.subr.msk.bf16.mxu1 %vm2461_vm3, %v2087_v41 }
  0x92   : > { %2044 = vmatpush3.bf16.xpose.msk.msra.mxu0 %vm2461_vm3, %v2042_v51 }
  0x93   : > { %2092 = vmatpush3.bf16.xpose.msk.msra.mxu1 %vm2461_vm3, %v2090_v52  ;;  %2047 = vmatprep.subr.msk.bf16.mxu0 %vm2461_vm3, %v2045_v53 }
  0x94   : > { %2095 = vmatprep.subr.msk.bf16.mxu1 %vm2461_vm3, %v2093_v54 }
  0x9a   : > { %2050 = vmatpush3.bf16.xpose.msk.msra.mxu0 %vm2461_vm3, %v2048_v0 }
  0x9b   : > { %2098 = vmatpush3.bf16.xpose.msk.msra.mxu1 %vm2461_vm3, %v2096_v1  ;;  %2053 = vmatprep.subr.msk.bf16.mxu0 %vm2461_vm3, %v2051_v2 }
  0x9c   : > { %2101 = vmatprep.subr.msk.bf16.mxu1 %vm2461_vm3, %v2099_v3 }
  0xa2   : > { %2056 = vmatpush3.bf16.xpose.msk.msra.mxu0 %vm2461_vm3, %v2054_v9 }
  0xa3   : > { %2104 = vmatpush3.bf16.xpose.msk.msra.mxu1 %vm2461_vm3, %v2102_v10 }
  0xa9   : > { %1874 = vmatmul.mubr.msk.f32.vlgmr.msra.gmra.mrb[4].mxu0 %vm494_vm2, %v2517_v47 }
  0xaa   : > { %1910 = vmatmul.mubr.msk.f32.vlgmr.msra.gmra.mrb[4].mxu1 %vm494_vm2, %v2517_v47  ;;  %1875 = vmatprep.mubr.msk.f32.mxu0 %vm494_vm2, %v2618_v56 }
  0xab   : > { %1911 = vmatprep.mubr.msk.f32.mxu1 %vm494_vm2, %v2618_v56 }
  0xad   : > { %1876 = vmatmul.mubr.msk.f32.gmra.mrb[6].mxu0 %vm494_vm2, %v2618_v56 }
  0xae   : > { %1912 = vmatmul.mubr.msk.f32.gmra.mrb[6].mxu1 %vm494_vm2, %v2618_v56  ;;  %v452_v56 = vld [vmem:[%s297_s11] sm:$0xff] }
  0xaf   : > { %v457_v24 = vrot.slane %v452_v56, %v456_v20  ;;  %v465_v25 = vrot.slane %v452_v56, %v464_v21  ;;  %v461_v26 = vrot.slane %v452_v56, %v460_v22  ;;  %v469_v27 = vrot.slane %v452_v56, %v468_v23  ;;  %v2824_v20 = vld [vmem:[#allocation2 + $0x8] sm:$0xff] }
  0xb0   : > { %v473_v36 = vrot.slane %v452_v56, %v472_v28  ;;  %v481_v37 = vrot.slane %v452_v56, %v480_v29  ;;  %v477_v38 = vrot.slane %v452_v56, %v476_v30  ;;  %v485_v39 = vrot.slane %v452_v56, %v484_v31 }
  0xb1   : > { %v1205_v30 = vstv %s1760_s6 }
 0x13c   : > { %v951_v11 = vpop.f32.mrb[0].mxu0 }
 0x13d   : > { %v1028_v12 = vpop.f32.mrb[0].mxu1  ;;  %v953_v13 = vpop.f32.mrb[1].mxu0  ;;  %v2762_v32 = vadd.f32 %v951_v11, %v457_v24 }
 0x13e   : > { %v1030_v47 = vpop.f32.mrb[1].mxu1  ;;  %v2764_v33 = vadd.f32 %v1028_v12, %v465_v25  ;;  %v2766_v34 = vadd.f32 %v953_v13, %v461_v26  ;;  %v2811_v12 = vld [vmem:[%s2438_s24] sm:$0xff] }
 0x13f   : > { %v2768_v35 = vadd.f32 %v1030_v47, %v469_v27 }
 0x140   : > { %v957_v14 = vpop.f32.mrb[2].mxu0  ;;  %v1279_v42 = vmax.f32 %v2762_v32, %v2764_v33  ;;  %v1392_v13 = vadd.f32 %v2766_v34, %v2762_v32 }
 0x141   : > { %v1034_v15 = vpop.f32.mrb[2].mxu1  ;;  %v959_v16 = vpop.f32.mrb[3].mxu0  ;;  %v1280_v43 = vmax.f32 %v2766_v34, %v2768_v35  ;;  %v2774_v44 = vadd.f32 %v957_v14, %v457_v24 }
 0x142   : > { %v1036_v17 = vpop.f32.mrb[3].mxu1  ;;  %v2776_v45 = vadd.f32 %v1034_v15, %v465_v25  ;;  %v2782_v51 = vadd.f32 %v959_v16, %v461_v26  ;;  %v1393_v47 = vadd.f32 %v1392_v13, %v2764_v33  ;;  %v2818_v15 = vld [vmem:[#allocation2] sm:$0xff]  ;;  %v2841_v25 = vand.u32 127, %v454_v18 }
 0x143   : > { %v2784_v52 = vadd.f32 %v1036_v17, %v469_v27  ;;  %v2845_v27 = vld [vmem:[%s2438_s24 + $0x8] sm:$0xff] }
 0x144   : > { %v1288_v1 = vmax.f32 %v2774_v44, %v2776_v45  ;;  %v1394_v14 = vadd.f32 %v1393_v47, %v2768_v35  ;;  %v1197_v28 = vadd.s32 128, %v2841_v25  ;;  %v2852_v31 = vadd.s32 %v1205_v30, %v2841_v25 }
 0x145   : > { %v1289_v5 = vmax.f32 %v2782_v51, %v2784_v52 }
 0x17c   : > { %v1105_v40 = vpop.f32.mrb[4].mxu0 }
 0x17d   : > { %v1182_v41 = vpop.f32.mrb[4].mxu1  ;;  %v2778_v46 = vadd.f32 %v1105_v40, %v473_v36  ;;  %v1107_v48 = vpop.f32.mrb[5].mxu0  ;;  %v1199_v40 = vadd.s32 384, %v2841_v25 }
 0x17e   : > { %v2780_v49 = vadd.f32 %v1182_v41, %v481_v37  ;;  %v1184_v50 = vpop.f32.mrb[5].mxu1  ;;  %v2786_v53 = vadd.f32 %v1107_v48, %v477_v38 }
 0x17f   : > { %v2788_v54 = vadd.f32 %v1184_v50, %v485_v39  ;;  %v1281_v55 = vmax.f32 %v1279_v42, %v2778_v46  ;;  %v1395_v16 = vadd.f32 %v1394_v14, %v2778_v46  ;;  %v1200_v50 = vadd.s32 512, %v2841_v25 }
 0x180   : > { %v1111_v57 = vpop.f32.mrb[6].mxu0  ;;  %v1282_v59 = vmax.f32 %v1280_v43, %v2786_v53 }
 0x181   : > { %v1188_v58 = vpop.f32.mrb[6].mxu1  ;;  %v2792_v60 = vadd.f32 %v1111_v57, %v473_v36  ;;  %v1113_v61 = vpop.f32.mrb[7].mxu0  ;;  %v1283_v0 = vmax.f32 %v1281_v55, %v2780_v49  ;;  %v1396_v22 = vadd.f32 %v1395_v16, %v2786_v53  ;;  %v2854_v36 = vadd.s32 %v1205_v30, %v1197_v28 }
 0x182   : > { %v2794_v62 = vadd.f32 %v1188_v58, %v481_v37  ;;  %v1190_v63 = vpop.f32.mrb[7].mxu1  ;;  %v2799_v2 = vadd.f32 %v1113_v61, %v477_v38  ;;  %v1284_v4 = vmax.f32 %v1282_v59, %v2788_v54  ;;  %v1198_v38 = vadd.s32 256, %v2841_v25 }
 0x183   : > { %v2801_v3 = vadd.f32 %v1190_v63, %v485_v39  ;;  %v1290_v7 = vmax.f32 %v1288_v1, %v2792_v60  ;;  %v1397_v26 = vadd.f32 %v1396_v22, %v2780_v49  ;;  %v2868_v55 = vadd.s32 %v1205_v30, %v1199_v40 }
 0x184   : > { %v1285_v8 = vmax.f32 %v1283_v0, %v1284_v4  ;;  %v1291_v9 = vmax.f32 %v1289_v5, %v2799_v2  ;;  %v2862_v41 = vadd.s32 %v1205_v30, %v1198_v38  ;;  %v1201_v61 = vadd.s32 640, %v2841_v25 }
 0x185   : > { %v1292_v10 = vmax.f32 %v1290_v7, %v2794_v62  ;;  %v1398_v29 = vadd.f32 %v1397_v26, %v2788_v54  ;;  %v2874_v63 = vadd.s32 %v1205_v30, %v1200_v50  ;;  %v1202_v5 = vadd.s32 768, %v2841_v25 }
 0x186   : > { %1286 = vmax.xlane.f32.xlu0 %v1285_v8  ;;  %v1293_v6 = vmax.f32 %v1291_v9, %v2801_v3  ;;  %v2880_v7 = vadd.s32 %v1205_v30, %v1201_v61 }
 0x187   : > { %v1399_v18 = vadd.f32 %v1398_v29, %v2774_v44 }
 0x188   : > { %v1294_v11 = vmax.f32 %v1292_v10, %v1293_v6  ;;  %v1203_v6 = vadd.s32 896, %v2841_v25 }
 0x189   : > { %v1400_v39 = vadd.f32 %v1399_v18, %v2782_v51 }
 0x18a   : > { %1295 = vmax.xlane.f32.xlu0 %v1294_v11  ;;  %v2886_v11 = vadd.s32 %v1205_v30, %v1202_v5  ;;  %v2891_v16 = vadd.s32 %v1205_v30, %v1203_v6 }
 0x18b   : > { %v1401_v48 = vadd.f32 %v1400_v39, %v2776_v45 }
 0x18d   : > { %v1402_v58 = vadd.f32 %v1401_v48, %v2784_v52 }
 0x18f   : > { %v1403_v1 = vadd.f32 %v1402_v58, %v2792_v60 }
 0x191   : > { %v1404_v9 = vadd.f32 %v1403_v1, %v2799_v2 }
 0x193   : > { %v1405_v14 = vadd.f32 %v1404_v9, %v2794_v62 }
 0x1a0   : > { %1217 = vperm.xlu0 %2189, %v2811_v12  }
 0x213   : > { %v1287_v17 = vpop.xlane.xlu0 %1286 }
 0x214   : > { %v2822_v19 = vmax.f32 %v2818_v15, %v1287_v17 }
 0x216   : > { %v1301_v21 = vsub.f32 %v2818_v15, %v2822_v19  ;;  %1389 = vst.msk [vmem:[#allocation2] sm:$0xff] %vm1274_vm4, %v2822_v19  ;;  %1311 = vperm.xlu1 %2188, %v2822_v19  }
 0x217   : > { %v1296_v23 = vpop.xlane.xlu0 %1295 }
 0x218   : > { %v2833_v56 = vmax.f32 %v2824_v20, %v1296_v23  ;;  %v1406_v23 = vadd.f32 %v1405_v14, %v2801_v3 }
 0x21a   : > { %v1302_v24 = vsub.f32 %v2824_v20, %v2833_v56  ;;  %1390 = vst.msk [vmem:[#allocation2 + $0x8] sm:$0xff] %vm1274_vm4, %v2833_v56  ;;  %1316 = vperm.xlu1 %2188, %v2833_v56  }
 0x21e   : > { %1220 = vperm.xlu1 %2188, %v2845_v27  }
 0x21f   : > { %v1218_v37 = vpop.permute.xlu0 %1217 }
 0x220   : > { %vm1222_vm5 = vcmp.eq.s32.totalorder %v2852_v31, %v1218_v37  ;;  %vm1223_vm6 = vcmp.eq.s32.totalorder %v2854_v36, %v1218_v37  ;;  %vm1224_vm7 = vcmp.eq.s32.totalorder %v2862_v41, %v1218_v37  ;;  %vm1225_vm8 = vcmp.eq.s32.totalorder %v2868_v55, %v1218_v37 }
 0x221   : > { %v1238_v42 = vsel %vm1222_vm5, %v2762_v32, 0.0  ;;  %v1239_v43 = vsel %vm1223_vm6, %v2766_v34, 0.0  ;;  %v1240_v59 = vsel %vm1224_vm7, %v2764_v33, 0.0  ;;  %v1241_v4 = vsel %vm1225_vm8, %v2768_v35, 0.0 }
 0x222   : > { %v1254_v57 = vadd.f32 %v1239_v43, %v1238_v42  ;;  %vm1226_vm9 = vcmp.eq.s32.totalorder %v2874_v63, %v1218_v37  ;;  %vm1227_vm10 = vcmp.eq.s32.totalorder %v2880_v7, %v1218_v37  ;;  %vm1228_vm11 = vcmp.eq.s32.totalorder %v2886_v11, %v1218_v37 }
 0x223   : > { %v1242_v10 = vsel %vm1226_vm9, %v2778_v46, 0.0  ;;  %v1243_v47 = vsel %vm1227_vm10, %v2786_v53, 0.0  ;;  %v1244_v22 = vsel %vm1228_vm11, %v2780_v49, 0.0  ;;  %vm1229_vm12 = vcmp.eq.s32.totalorder %v2891_v16, %v1218_v37 }
 0x224   : > { %v1255_v0 = vadd.f32 %v1254_v57, %v1240_v59  ;;  %v1245_v28 = vsel %vm1229_vm12, %v2788_v54, 0.0  ;;  %vm1418_vm6 = vcmask 0   ;;  %vm1438_vm7 = vcmp.ne.s32.totalorder (!%p1761_p2), %v2811_v12, 4294967196 }
 0x225   : > { %vm1439_vm8 = vcmp.ne.s32.totalorder (!%p1761_p2), %v2845_v27, 4294967196  ;;  %vm1473_vm9 = vcmp.eq.s32.totalorder (!%p1761_p2), %v2841_v25, 1  ;;  %vm1472_vm10 = vcmp.eq.s32.totalorder (!%p1761_p2), %v2841_v25, 0 }
 0x226   : > { %v1256_v8 = vadd.f32 %v1255_v0, %v1241_v4 }
 0x228   : > { %v1257_v13 = vadd.f32 %v1256_v8, %v1242_v10 }
 0x22a   : > { %v1258_v17 = vadd.f32 %v1257_v13, %v1243_v47 }
 0x22c   : > { %v1259_v26 = vadd.f32 %v1258_v17, %v1244_v22 }
 0x22e   : > { %v1260_v29 = vadd.f32 %v1259_v26, %v1245_v28 }
 0x242   : > { %1407 = vadd.xlane.f32.xlu1 %v1406_v23 }
 0x246   : > { %1261 = vadd.xlane.f32.xlu1 %v1260_v29 }
 0x295   : > { %v1312_v18 = vpop.permute.xlu1 %1311 }
 0x296   : > { %v1319_v38 = vsub.f32 %v2762_v32, %v1312_v18  ;;  %v1320_v30 = vsub.f32 %v2766_v34, %v1312_v18  ;;  %v1321_v39 = vsub.f32 %v2764_v33, %v1312_v18  ;;  %v1322_v40 = vsub.f32 %v2768_v35, %v1312_v18 }
 0x297   : > { %v1323_v33 = vsub.f32 %v2778_v46, %v1312_v18  ;;  %v1324_v61 = vsub.f32 %v2786_v53, %v1312_v18  ;;  %v1325_v0 = vsub.f32 %v2780_v49, %v1312_v18  ;;  %v1326_v49 = vsub.f32 %v2788_v54, %v1312_v18 }
 0x298   : > { %v1335_v42 = vmul.f32 1.442695, %v1319_v38  ;;  %v1337_v43 = vmul.f32 1.442695, %v1320_v30  ;;  %v1339_v48 = vmul.f32 1.442695, %v1321_v39 }
 0x299   : > { %v1341_v50 = vmul.f32 1.442695, %v1322_v40  ;;  %v2902_v37 = vpop.permute.xlu1 %1316  ;;  %v1343_v4 = vmul.f32 1.442695, %v1323_v33  ;;  %v1345_v8 = vmul.f32 1.442695, %v1324_v61 }
 0x29a   : > { %2190 = vpow2.f32 %v1335_v42  ;;  %v1327_v57 = vsub.f32 %v2774_v44, %v2902_v37  ;;  %v1328_v58 = vsub.f32 %v2782_v51, %v2902_v37  ;;  %v1329_v32 = vsub.f32 %v2776_v45, %v2902_v37 }
 0x29b   : > { %2192 = vpow2.f32 %v1337_v43  ;;  %v1330_v46 = vsub.f32 %v2784_v52, %v2902_v37  ;;  %v1347_v9 = vmul.f32 1.442695, %v1325_v0  ;;  %v1334_v26 = vsub.f32 %v2801_v3, %v2902_v37 }
 0x29c   : > { %2194 = vpow2.f32 %v1339_v48  ;;  %v1351_v34 = vmul.f32 1.442695, %v1327_v57  ;;  %v1353_v35 = vmul.f32 1.442695, %v1328_v58  ;;  %v1355_v1 = vmul.f32 1.442695, %v1329_v32 }
 0x29d   : > { %v2911_v59 = vpop.permute.xlu1 %1220  ;;  %2196 = vpow2.f32 %v1341_v50  ;;  %v1357_v10 = vmul.f32 1.442695, %v1330_v46  ;;  %v1365_v43 = vmul.f32 1.442695, %v1334_v26  ;;  %v1299_v26 = vld [vmem:[#allocation3] sm:$0xff] }
 0x29e   : > { %2198 = vpow2.f32 %v1351_v34  ;;  %vm1230_vm13 = vcmp.eq.s32.totalorder %v2852_v31, %v2911_v59  ;;  %vm1231_vm14 = vcmp.eq.s32.totalorder %v2854_v36, %v2911_v59  ;;  %vm1232_vm15 = vcmp.eq.s32.totalorder %v2862_v41, %v2911_v59 }
 0x29f   : > { %2200 = vpow2.f32 %v1353_v35  ;;  %v1246_v53 = vsel %vm1230_vm13, %v2774_v44, 0.0  ;;  %v1247_v5 = vsel %vm1231_vm14, %v2782_v51, 0.0  ;;  %v1331_v31 = vsub.f32 %v2792_v60, %v2902_v37 }
 0x2a0   : > { %2202 = vpow2.f32 %v1355_v1  ;;  %vm1233_vm0 = vcmp.eq.s32.totalorder %v2868_v55, %v2911_v59  ;;  %v1263_v36 = vadd.f32 %v1247_v5, %v1246_v53  ;;  %v1248_v6 = vsel %vm1232_vm15, %v2776_v45, 0.0 }
 0x2a1   : > { %2204 = vpow2.f32 %v1343_v4  ;;  %v1332_v44 = vsub.f32 %v2799_v2, %v2902_v37  ;;  %vm1234_vm1 = vcmp.eq.s32.totalorder %v2874_v63, %v2911_v59  ;;  %v1349_v41 = vmul.f32 1.442695, %v1326_v49 }
 0x2a2   : > { %v1264_v51 = vadd.f32 %v1263_v36, %v1248_v6  ;;  %v1249_v47 = vsel %vm1233_vm0, %v2784_v52, 0.0  ;;  %2206 = vpow2.f32 %v1345_v8  ;;  %v1333_v55 = vsub.f32 %v2794_v62, %v2902_v37  ;;  %v1214_v36 = vld [vmem:[#allocation4] sm:$0xff] }
 0x2a3   : > { %v1359_v14 = vmul.f32 1.442695, %v1331_v31  ;;  %vm1235_vm2 = vcmp.eq.s32.totalorder %v2880_v7, %v2911_v59  ;;  %2208 = vpow2.f32 %v1347_v9  ;;  %v1250_v63 = vsel %vm1234_vm1, %v2792_v60, 0.0 }
 0x2a4   : > { %v2191_v54 = vpop.eup %2190  ;;  %v1265_v45 = vadd.f32 %v1264_v51, %v1249_v47  ;;  %2210 = vpow2.f32 %v1357_v10  ;;  %v1361_v52 = vmul.f32 1.442695, %v1332_v44  ;;  %vm1236_vm3 = vcmp.eq.s32.totalorder %v2886_v11, %v2911_v59 }
 0x2a5   : > { %v2193_v13 = vpop.eup %2192  ;;  %2212 = vpow2.f32 %v1349_v41  ;;  %v1251_v7 = vsel %vm1235_vm2, %v2799_v2, 0.0  ;;  %v1363_v30 = vmul.f32 1.442695, %v1333_v55  ;;  %vm1237_vm5 = vcmp.eq.s32.totalorder %v2891_v16, %v2911_v59 }
 0x2a6   : > { %v2195_v17 = vpop.eup %2194  ;;  %v1367_v22 = vadd.f32 %v2193_v13, %v2191_v54  ;;  %v1266_v29 = vadd.f32 %v1265_v45, %v1250_v63  ;;  %2214 = vpow2.f32 %v1359_v14  ;;  %v1252_v42 = vsel %vm1236_vm3, %v2794_v62, 0.0  ;;  %v1391_v13 = vld [vmem:[#allocation5] sm:$0x1]  ;;  %v1215_v45 = vld [vmem:[#allocation4 + $0x8] sm:$0xff] }
 0x2a7   : > { %v2197_v23 = vpop.eup %2196  ;;  %2216 = vpow2.f32 %v1361_v52  ;;  %v1253_v37 = vsel %vm1237_vm5, %v2801_v3, 0.0  ;;  %v1303_v14 = vmul.f32 1.442695, %v1301_v21 }
 0x2a8   : > { %v2199_v28 = vpop.eup %2198  ;;  %v1368_v18 = vadd.f32 %v2195_v17, %v1367_v22  ;;  %v1267_v60 = vadd.f32 %v1266_v29, %v1251_v7  ;;  %2218 = vpow2.f32 %v1363_v30  ;;  %v1305_v17 = vmul.f32 1.442695, %v1302_v24  ;;  %v1426_v7 = vld [vmem:[#allocation2] sm:$0xff] (!%p1761_p2) }
 0x2a9   : > { %v2201_v38 = vpop.eup %2200  ;;  %2220 = vpow2.f32 %v1365_v43 }
 0x2aa   : > { %v1369_v39 = vadd.f32 %v2197_v23, %v1368_v18  ;;  %v1376_v40 = vadd.f32 %v2201_v38, %v2199_v28  ;;  %v2203_v48 = vpop.eup %2202  ;;  %v1268_v11 = vadd.f32 %v1267_v60, %v1252_v42  ;;  %2222 = vpow2.f32 %v1303_v14  ;;  %v1300_v38 = vld [vmem:[#allocation3 + $0x8] sm:$0xff]  ;;  %v1427_v60 = vld [vmem:[#allocation2 + $0x8] sm:$0xff] (!%p1761_p2) }
 0x2ab   : > { %v2205_v50 = vpop.eup %2204  ;;  %2224 = vpow2.f32 %v1305_v17 }
 0x2ac   : > { %v1269_v57 = vadd.f32 %v1268_v11, %v1253_v37  ;;  %v1370_v2 = vadd.f32 %v2205_v50, %v1369_v39  ;;  %v1377_v58 = vadd.f32 %v2203_v48, %v1376_v40  ;;  %v2207_v32 = vpop.eup %2206  ;;  %v2329_v50 = vmov (!%p1761_p2), 0.0  }
 0x2ad   : > { %v2209_v33 = vpop.eup %2208  ;;  %v1762_v37 = vsel (!%p1761_p2), %vm1438_vm7, 1.0, %v2329_v50 }
 0x2ae   : > { %1270 = vadd.xlane.f32.xlu0 %v1269_v57  ;;  %v1371_v16 = vadd.f32 %v2207_v32, %v1370_v2  ;;  %v2211_v34 = vpop.eup %2210  ;;  %v1763_v2 = vsel (!%p1761_p2), %vm1439_vm8, 1.0, %v2329_v50  ;;  %v1458_v12 = vsel (!%p1761_p2), %vm1274_vm4, %v1762_v37, 0.0 }
 0x2af   : > { %v2213_v35 = vpop.eup %2212  ;;  %v1378_v62 = vadd.f32 %v2211_v34, %v1377_v58 }
 0x2b0   : > { %v1372_v59 = vadd.f32 %v2209_v33, %v1371_v16  ;;  %v2215_v61 = vpop.eup %2214 }
 0x2b1   : > { %v1379_v1 = vadd.f32 %v2215_v61, %v1378_v62  ;;  %v2217_v46 = vpop.eup %2216 }
 0x2b2   : > { %v1373_v0 = vadd.f32 %v2213_v35, %v1372_v59  ;;  %v2219_v3 = vpop.eup %2218  ;;  %v1459_v35 = vsel (!%p1761_p2), %vm1274_vm4, %v1763_v2, 0.0 }
 0x2b3   : > { %v1380_v4 = vadd.f32 %v2217_v46, %v1379_v1  ;;  %v2221_v49 = vpop.eup %2220  ;;  %v1460_v27 = vadd.f32 (!%p1761_p2), %v1459_v35, %v1458_v12 }
 0x2b4   : > { %1374 = vadd.xlane.f32.xlu1 %v1373_v0  ;;  %v2223_v63 = vpop.eup %2222 }
 0x2b5   : > { %v1381_v53 = vadd.f32 %v2219_v3, %v1380_v4  ;;  %v1307_v52 = vmul.f32 %v2223_v63, %v1299_v26  ;;  %v2225_v18 = vpop.eup %2224 }
 0x2b6   : > { %v1308_v15 = vmul.f32 %v2225_v18, %v1300_v38 }
 0x2b7   : > { %v1382_v5 = vadd.f32 %v2221_v49, %v1381_v53 }
 0x2b9   : > { %1383 = vadd.xlane.f32.xlu1 %v1382_v5 }
 0x2cf   : > { %v1408_v8 = vpop.xlane.xlu1 %1407 }
 0x2d0   : > { %v1409_v31 = vrot.slane %v1408_v8, 4 }
 0x2d2   : > { %v1410_v9 = vadd.f32 %v1409_v31, %v1408_v8 }
 0x2d3   : > { %v1262_v10 = vpop.xlane.xlu1 %1261 }
 0x2d4   : > { %v1411_v6 = vrot.slane %v1410_v9, 2  ;;  %v1272_v44 = vadd.f32 %v1262_v10, %v1214_v36 }
 0x2d6   : > { %1275 = vst.msk [vmem:[#allocation4] sm:$0xff] %vm1274_vm4, %v1272_v44  ;;  %v1412_v54 = vadd.f32 %v1411_v6, %v1410_v9 }
 0x2d8   : > { %v1413_v51 = vrot.slane %v1412_v54, 1 }
 0x2da   : > { %v1414_v41 = vadd.f32 %v1413_v51, %v1412_v54 }
 0x2dc   : > { %2105 = vpush %v1414_v41 }
 0x2dd   : > { %v1424_v24 = vld [vmem:[#allocation4] sm:$0xff] (!%p1761_p2) }
 0x2de   : > { %v1428_v39 = vsub.f32 (!%p1761_p2), %v1424_v24, %v1426_v7 }
 0x30d   : > { %s2106_s7 = spop %2105 }
 0x30e   : > { %v1416_v47 = vstv %s2106_s7 }
 0x30f   : > { %v1417_v55 = vadd.f32 %v1416_v47, %v1391_v13 }
 0x311   : > { %1419 = vst.msk [vmem:[#allocation5] sm:$0x1] %vm1418_vm6, %v1417_v55 }
 0x318   : > { %v1470_v10 = vld [vmem:[#allocation5] sm:$0x1] (!%p1761_p2) }
 0x33b   : > { %v1271_v22 = vpop.xlane.xlu0 %1270 }
 0x33c   : > { %v1273_v23 = vadd.f32 %v1271_v22, %v1215_v45 }
 0x33e   : > { %1276 = vst.msk [vmem:[#allocation4 + $0x8] sm:$0xff] %vm1274_vm4, %v1273_v23 }
 0x341   : > { %v1375_v28 = vpop.xlane.xlu1 %1374 }
 0x342   : > { %v1385_v29 = vadd.f32 %v1375_v28, %v1307_v52 }
 0x343   : > { %1423 = sbr.rel (%p1761_p2) target bundleno = 1083 (0x43b), region = 44 }
 0x344   : > { %1387 = vst.msk [vmem:[#allocation3] sm:$0xff] %vm1274_vm4, %v1385_v29 }
 0x345   : > { %v1425_v30 = vld [vmem:[#allocation4 + $0x8] sm:$0xff] (!%p1761_p2) }
 0x346   : > { %v1384_v19 = vpop.xlane.xlu1 %1383  ;;  %v1429_v42 = vsub.f32 (!%p1761_p2), %v1425_v30, %v1427_v60 }
 0x347   : > { %v1386_v21 = vadd.f32 %v1384_v19, %v1308_v15 }
 0x349   : > { %1388 = vst.msk [vmem:[#allocation3 + $0x8] sm:$0xff] %vm1274_vm4, %v1386_v21 }
 0x34b   : > { %v1430_v20 = vld [vmem:[#allocation3] sm:$0xff] }
 0x34c   : > { %2226 = vlog2.f32 %v1430_v20 }
 0x350   : > { %v1431_v56 = vld [vmem:[#allocation3 + $0x8] sm:$0xff] }
 0x351   : > { %2228 = vlog2.f32 %v1431_v56 }
 0x356   : > { %v2227_v40 = vpop.eup %2226 }
 0x357   : > { %v1433_v48 = vmul.f32 0.6931472, %v2227_v40 }
 0x359   : > { %v1436_v57 = vsub.f32 %v1428_v39, %v1433_v48 }
 0x35b   : > { %v2229_v43 = vpop.eup %2228  ;;  %v1444_v32 = vmul.f32 %v1762_v37, %v1436_v57 }
 0x35c   : > { %v1435_v11 = vmul.f32 0.6931472, %v2229_v43 }
 0x35d   : > { %v1446_v16 = vsel %vm1274_vm4, %v1444_v32, 0.0 }
 0x35e   : > { %v1437_v58 = vsub.f32 %v1429_v42, %v1435_v11 }
 0x360   : > { %v1445_v33 = vmul.f32 %v1763_v2, %v1437_v58 }
 0x362   : > { %v1447_v34 = vsel %vm1274_vm4, %v1445_v33, 0.0  ;;  %vm1474_vm4 = vcmp.eq.s32.totalorder %v2841_v25, 2 }
 0x363   : > { %v1448_v59 = vadd.f32 %v1447_v34, %v1446_v16 }
 0x365   : > { %1449 = vadd.xlane.f32.xlu0 %v1448_v59 }
 0x369   : > { %1461 = vadd.xlane.f32.xlu0 %v1460_v27 }
 0x3f2   : > { %v1450_v62 = vpop.xlane.xlu0 %1449 }
 0x3f3   : > { %v1451_v61 = vrot.slane %v1450_v62, 4 }
 0x3f5   : > { %v1452_v0 = vadd.f32 %v1451_v61, %v1450_v62 }
 0x3f6   : > { %v1462_v1 = vpop.xlane.xlu0 %1461 }
 0x3f7   : > { %v1453_v46 = vrot.slane %v1452_v0, 2  ;;  %v1463_v4 = vrot.slane %v1462_v1, 4 }
 0x3f9   : > { %v1464_v3 = vadd.f32 %v1463_v4, %v1462_v1  ;;  %v1454_v53 = vadd.f32 %v1453_v46, %v1452_v0 }
 0x3fb   : > { %v1465_v49 = vrot.slane %v1464_v3, 2  ;;  %v1455_v5 = vrot.slane %v1454_v53, 1 }
 0x3fd   : > { %v1466_v8 = vadd.f32 %v1465_v49, %v1464_v3  ;;  %v1456_v31 = vadd.f32 %v1455_v5, %v1454_v53 }
 0x3ff   : > { %2107 = vpush %v1456_v31  ;;  %v1467_v36 = vrot.slane %v1466_v8, 1 }
 0x401   : > { %v1468_v9 = vadd.f32 %v1467_v36, %v1466_v8 }
 0x403   : > { %2109 = vpush %v1468_v9 }
 0x404   : > { %2111 = vpush %v1470_v10 }
 0x430   : > { %s2108_s18 = spop %2107 }
 0x431   : > { %v1479_v51 = vstv %s2108_s18 }
 0x434   : > { %s2110_s9 = spop %2109 }
 0x435   : > { %v1477_v6 = vstv %s2110_s9  ;;  %s2112_s10 = spop %2111 }
 0x436   : > { %v1475_v44 = vstv %s2112_s10 }
 0x437   : > { %v1476_v54 = vsel %vm1474_vm4, %v1475_v44, 0.0 }
 0x438   : > { %v1478_v41 = vsel %vm1473_vm9, %v1477_v6, %v1476_v54 }
 0x439   : > { %v1480_v13 = vsel %vm1472_vm10, %v1479_v51, %v1478_v41 }
 0x43a   : > { %1481 = vst [vmem:[%s2453_s0] sm:$0x1] %v1480_v13 }
 0x43b PF: > { %s1764_s13 = sshll.u32 %s2312_s19, 4  ;;  %s1496_s29 = sshll.u32 %s2453_s0, 4  ;;  %s1497_s29 = int_to_ptr.vmem [resolvable:$true] %s1496_s29 }
 0x43c   : > { %s2975_s24 = scalar_lea.hbm %s3029_s4, %s1764_s13  ;;  %s3040_s30 = sand.u32 1, %s2300_s16  }
 0x43d   : > { %s1483_s8 = scalar_lea.sflag [#allocation7], %s3040_s30  ;;  %s2230_s11 = scalar_lea.vmem %s1497_s29, 16 }
 0x43e   : > { %p2231_p4 = scmp.ne.s32.totalorder %s1497_s29, %s2230_s11  ;;  %s2330_s12 = smov [#allocation6]  }
 0x43f   : > { %s2234_s25 = sshll.u32 %s2330_s12, 4  ;;  %s2235_s25 = int_to_ptr.vmem [resolvable:$false] %s2234_s25 }
 0x440   : > { %p2232_p5 = pnand %p2231_p4, %p2405_p3  ;;  %s2236_s26 = scalar_lea.vmem %s2235_s25, 32 }
 0x441   : > { %p2237_p7 = scmp.lt.s32.totalorder %s1497_s29, %s2235_s25  ;;  %p2238_p8 = scmp.lt.s32.totalorder %s2236_s26, %s2230_s11 }
 0x442   : > { %p2233_p6 = pneg %p2232_p5 }
 0x443   : > { %p2239_p10 = por %p2238_p8, %p2237_p7 }
 0x445   : > { %p2240_p11 = pnand %p2239_p10, %p2233_p6 }
 0x447   : > { %2243 = shalt.err (!%p2240_p11)
}
 0x448   : > { %s2244_s0 = scalar_lea.hbm %s2975_s24, 16  ;;  %s2248_s7 = scalar_lea.hbm %s3029_s4, 64 }
 0x449   : > { %p2245_p12 = scmp.ne.s32.totalorder %s2975_s24, %s2244_s0  ;;  %p2249_p1 = scmp.lt.u32.totalorder %s2975_s24, %s3029_s4 }
 0x44a   : > { %p2250_p2 = scmp.lt.u32.totalorder %s2248_s7, %s2244_s0  ;;  %p2252_p5 = scmp.lt.u32.totalorder %s2244_s0, %s2975_s24 }
 0x44b   : > { %p2246_p13 = pnand %p2245_p12, %p2405_p3 }
 0x44c   : > { %p2251_p4 = por %p2250_p2, %p2249_p1 }
 0x44d   : > { %p2247_p0 = pneg %p2246_p13 }
 0x44e   : > { %p2253_p6 = por %p2252_p5, %p2251_p4 }
 0x450   : > { %p2254_p7 = pnand %p2253_p6, %p2247_p0 }
 0x452   : > { %2257 = shalt.err (!%p2254_p7)
}
 0x453   : > { %2113 = dma.vmem_to_hbm [thread:$0]  (%p2405_p3), %s1497_s29, 16, %s2975_s24, %s1483_s8  }
 0x454 PF: > { %p2119_p8 = scmp.ge.s32.totalorder %s2324_s22, 2  ;;  %s1508_s10 = sand.u32 1, %s2296_s15  }
 0x455   : > { %s1509_s13 = scalar_lea.sflag [#allocation7], %s1508_s10 }
 0x456   : > { %p2116_p10 = pnand %p2119_p8, %p2415_p9 }
 0x458   : > { %2291 = dma.done.wait (!%p2116_p10), %s1509_s13, 16  }
 0x459   : > { %2293 = vsyncadd (!%p2116_p10), %s1509_s13, 4294967280  ;;  %s17_s22 = sadd.s32 1, %s2324_s22   ;;  %s3041_s27 = sld [smem:[#allocation9_spill]] }
 0x45a   : > { %p14_p11 = scmp.ge.s32.totalorder %s17_s22, 10   ;;  %s3042_s14 = sld [smem:[#allocation10_spill]] }
 0x45b   : > { %s3043_s15 = smov %s2300_s16  ;;  %s3044_s16 = smov %s2304_s17 }
 0x45c   : > { %s3045_s17 = smov %s2423_s5  ;;  %s3046_s18 = smov %s2316_s20 }
 0x45d   : > { %s3047_s19 = smov %s2320_s21  ;;  %16 = sbr.rel (!%p14_p11) target bundleno = 7 (0x7), region = 88 }
 0x45f   : > { %s3048_s20 = smov %s3041_s27 }
 0x460   : > { %s3049_s21 = smov %s3042_s14 }
 0x464   :  { %1513 = vsyncpa [#allocation7], 1 }
 0x465   :  { %1515 = vsyncpa [#allocation7 + $0x1], 1 }

</bundles_post_ra>
